<compile_context>
chip_gen: v6e
topology: v6e:2x2x1
jax: 0.10.0
libtpu: 0.0.40
codegen_flags: <defaults>
</compile_context>

<pallas_src>
import functools

import jax
import jax.numpy as jnp
from jax import lax
from jax.experimental import pallas as pl
from jax.experimental.pallas import tpu as pltpu


# ----------------------------------------------------------------------------
# Fused Pallas kernel: full 2-block resnet18_pnf path for ONE head (grid axis).
# ----------------------------------------------------------------------------
def _fused_kernel(x_ref, mask_ref,
                  w1_ref, b1_ref, wd_ref, bd_ref,
                  w2_ref, b2_ref, w3_ref, b3_ref, w4_ref, b4_ref,
                  o_ref, col_ref, *, W, M, C):
    x = x_ref[...]                                   # (C, M) f32, lane-dense
    shifts = [((t // 3) - 1) * W + ((t % 3) - 1) for t in range(9)]

    def build_cols(act):
        # Write the 9 shifted + masked taps of `act` into the (9*C, M) im2col
        # scratch.  jnp.roll is circular; wrapped lanes are positions where the
        # border mask is 0, so masking yields exactly the zero-padded 3x3 tap.
        for t, s in enumerate(shifts):
            if s == 0:
                col_ref[t * C:(t + 1) * C, :] = act
            else:
                col_ref[t * C:(t + 1) * C, :] = (
                    jnp.roll(act, -s, axis=1) * mask_ref[t])

    def conv(w):                                     # one (C,9C)@(9C,M) MXU dot
        return jnp.dot(w, col_ref[...], preferred_element_type=jnp.float32)

    # Residual path of block1 (conv1x1 + BN folded; identity packed as eye).
    ident = jnp.dot(wd_ref[0], x, preferred_element_type=jnp.float32) + bd_ref[0]

    # block1: relu(film1(bn1(conv1(x))))      (BN*FiLM scale folded into w1)
    build_cols(x)
    h1 = jnp.maximum(conv(w1_ref[0]) + b1_ref[0], 0.0)
    # block1: relu(film2(bn2(conv2(.))) + downsample(x))
    build_cols(h1)
    h2 = jnp.maximum(conv(w2_ref[0]) + b2_ref[0] + ident, 0.0)
    # block2: relu(film1(bn1(conv1(.))))
    build_cols(h2)
    g1 = jnp.maximum(conv(w3_ref[0]) + b3_ref[0], 0.0)
    # block2: relu(film2(bn2(conv2(.))) + identity)   (block2 has no downsample)
    build_cols(g1)
    o_ref[0] = jnp.maximum(conv(w4_ref[0]) + b4_ref[0] + h2, 0.0).astype(o_ref.dtype)


def _run_fused(x_cm, masks, fp, n_heads, W, M, C, out_dtype=jnp.bfloat16):
    kernel = functools.partial(_fused_kernel, W=W, M=M, C=C)

    def head_spec(arr):
        return pl.BlockSpec((1,) + arr.shape[1:], lambda h: (h, 0, 0))

    in_specs = [
        pl.BlockSpec((C, M), lambda h: (0, 0)),            # x      (shared)
        pl.BlockSpec((9, 1, M), lambda h: (0, 0, 0)),      # masks  (shared)
        head_spec(fp['w1']), head_spec(fp['b1']),
        head_spec(fp['wd']), head_spec(fp['bd']),
        head_spec(fp['w2']), head_spec(fp['b2']),
        head_spec(fp['w3']), head_spec(fp['b3']),
        head_spec(fp['w4']), head_spec(fp['b4']),
    ]
    return pl.pallas_call(
        kernel,
        grid=(n_heads,),
        in_specs=in_specs,
        out_specs=pl.BlockSpec((1, C, M), lambda h: (h, 0, 0)),
        out_shape=jax.ShapeDtypeStruct((n_heads, C, M), out_dtype),
        scratch_shapes=[pltpu.VMEM((9 * C, M), jnp.float32)],   # im2col scratch
        compiler_params=pltpu.CompilerParams(
            dimension_semantics=("parallel",)),                  # 2 TCs on v7x
    )(x_cm, masks, fp['w1'], fp['b1'], fp['wd'], fp['bd'],
      fp['w2'], fp['b2'], fp['w3'], fp['b3'], fp['w4'], fp['b4'])


# ----------------------------------------------------------------------------
# BN/FiLM folding and wrapper-side parameter packing.
# ----------------------------------------------------------------------------
def fold_bn_film(bn, film, head_idx, eps=1e-5):
    rstd = 1.0 / jnp.sqrt(bn['rv'] + eps)
    bn_s = bn['w'] * rstd
    bn_b = bn['b'] - bn['rm'] * bn_s
    gamma = film['gamma'][head_idx]
    beta = film['beta'][head_idx]
    return gamma * bn_s, gamma * bn_b + beta


def fold_bn(bn, eps=1e-5):
    rstd = 1.0 / jnp.sqrt(bn['rv'] + eps)
    s = bn['w'] * rstd
    return s, bn['b'] - bn['rm'] * s


def _make_tap_masks(N, H, W, dtype):
    m = jnp.arange(N * H * W, dtype=jnp.int32)
    ys = (m // W) % H
    xs = m % W
    rows = []
    for t in range(9):
        dy, dx = t // 3 - 1, t % 3 - 1
        ok = ((ys + dy >= 0) & (ys + dy < H) & (xs + dx >= 0) & (xs + dx < W))
        rows.append(ok)
    return jnp.stack(rows).astype(dtype).reshape(9, 1, N * H * W)


def _fold_head_params(blocks, head, C):
    """Fold BN/FiLM into packed per-head conv weights padded to C channels."""
    b1, b2 = blocks
    cin = b1['conv1'].shape[2]
    cout = b1['conv1'].shape[3]

    def pack3x3(w_hwio, scale):
        ci, co = w_hwio.shape[2], w_hwio.shape[3]
        w = w_hwio.reshape(9, ci, co) * scale[None, None, :]
        w = jnp.transpose(w, (2, 0, 1))                      # (co, 9, ci)
        w = jnp.pad(w, ((0, C - co), (0, 0), (0, C - ci)))   # (C, 9, C)
        return w.reshape(C, 9 * C).astype(jnp.float32)

    def col(v):
        return jnp.pad(v, (0, C - v.shape[0])).reshape(C, 1).astype(jnp.float32)

    s1, c1 = fold_bn_film(b1['bn1'], b1['film1'], head)
    s2, c2 = fold_bn_film(b1['bn2'], b1['film2'], head)
    s3, c3 = fold_bn_film(b2['bn1'], b2['film1'], head)
    s4, c4 = fold_bn_film(b2['bn2'], b2['film2'], head)

    p = {'w1': pack3x3(b1['conv1'], s1), 'b1': col(c1),
         'w2': pack3x3(b1['conv2'], s2), 'b2': col(c2),
         'w3': pack3x3(b2['conv1'], s3), 'b3': col(c3),
         'w4': pack3x3(b2['conv2'], s4), 'b4': col(c4)}

    if 'convd' in b1:                                # conv1x1 + BN downsample
        sd, bd = fold_bn(b1['bnd'])
        wd = b1['convd'].T * sd[:, None]             # (cout, cin)
    else:                                            # cin == cout: pass-through
        wd = jnp.eye(cout, cin, dtype=jnp.float32)
        bd = jnp.zeros((cout,), jnp.float32)
    p['wd'] = jnp.pad(wd, ((0, C - cout), (0, C - cin))).astype(jnp.float32)
    p['bd'] = col(bd)
    return p


def backbone_module_forward(x_nchw, params, multi_head, identity=True):
    """Mirrors BackboneModule.forward(x, module_idx=None): list of per-head NCHW."""
    N, Cin, H, W = x_nchw.shape
    M = N * H * W
    cout = params['blocks'][0]['conv1'].shape[3]
    C = max(-(-max(Cin, cout) // 8) * 8, 8)          # channel pad -> aligned tiles

    x_cm = jnp.transpose(x_nchw.astype(jnp.float32), (1, 0, 2, 3)).reshape(Cin, M)
    x_cm = jnp.pad(x_cm, ((0, C - Cin), (0, 0)))
    masks = _make_tap_masks(N, H, W, jnp.float32)

    n_shared = multi_head - 1 if identity else multi_head
    head_params = [(params['blocks'], h) for h in range(n_shared)]
    if identity:
        head_params.append((params['identity_blocks'], 0))

    folded = [_fold_head_params(bp, h, C) for bp, h in head_params]
    fp = {k: jnp.stack([f[k] for f in folded]) for k in folded[0]}

    out = _run_fused(x_cm, masks, fp, len(head_params), W, M, C)   # (NH, C, M) bf16

    outs = []
    for h in range(len(head_params)):
        o = out[h, :cout].astype(jnp.float32).reshape(cout, N, H, W)
        outs.append(jnp.transpose(o, (1, 0, 2, 3)))
    return outs


# ----------------------------------------------------------------------------
# Pure-JAX reference (f32) used for the correctness check.
# ----------------------------------------------------------------------------
def _ref_basic_block(x_nhwc, p, head):
    conv3 = lambda a, w: lax.conv_general_dilated(
        a, w, (1, 1), 'SAME', dimension_numbers=('NHWC', 'HWIO', 'NHWC'))
    s1, b1 = fold_bn_film(p['bn1'], p['film1'], head)
    out = jax.nn.relu(conv3(x_nhwc, p['conv1']) * s1 + b1)
    if 'convd' in p:
        sd, bd = fold_bn(p['bnd'])
        ident = jnp.einsum('nhwi,io->nhwo', x_nhwc, p['convd']) * sd + bd
    else:
        ident = x_nhwc
    s2, b2 = fold_bn_film(p['bn2'], p['film2'], head)
    return jax.nn.relu(conv3(out, p['conv2']) * s2 + b2 + ident)


def reference_forward(x_nchw, params, multi_head, identity=True):
    x = jnp.transpose(x_nchw, (0, 2, 3, 1)).astype(jnp.float32)
    outs = []
    for m in range(multi_head):
        h = x
        if identity and m == multi_head - 1:
            for bp in params['identity_blocks']:
                h = _ref_basic_block(h, bp, 0)
        else:
            for bp in params['blocks']:
                h = _ref_basic_block(h, bp, m)
        outs.append(jnp.transpose(h, (0, 3, 1, 2)))
    return outs


# ----------------------------------------------------------------------------
# Deterministic synthetic parameter init (shapes follow BasicBlockFilm).
# ----------------------------------------------------------------------------
def _init_bn(key, c):
    k = jax.random.split(key, 4)
    return {
        'w': 1.0 + 0.1 * jax.random.normal(k[0], (c,), jnp.float32),
        'b': 0.1 * jax.random.normal(k[1], (c,), jnp.float32),
        'rm': 0.1 * jax.random.normal(k[2], (c,), jnp.float32),
        'rv': jax.random.uniform(k[3], (c,), jnp.float32, 0.5, 1.5),
    }


def _init_film(key, n_heads, c):
    k = jax.random.split(key, 2)
    return {
        'gamma': 1.0 + 0.1 * jax.random.normal(k[0], (n_heads, c), jnp.float32),
        'beta': 0.1 * jax.random.normal(k[1], (n_heads, c), jnp.float32),
    }


def init_basic_block_film(key, cin, cout, n_heads):
    k = jax.random.split(key, 8)
    p = {
        'conv1': 0.1 * jax.random.normal(k[0], (3, 3, cin, cout), jnp.float32),
        'bn1': _init_bn(k[1], cout),
        'film1': _init_film(k[2], n_heads, cout),
        'conv2': 0.1 * jax.random.normal(k[3], (3, 3, cout, cout), jnp.float32),
        'bn2': _init_bn(k[4], cout),
        'film2': _init_film(k[5], n_heads, cout),
    }
    if cin != cout:   # downsample (stride==1 here; channel mismatch triggers it)
        p['convd'] = 0.1 * jax.random.normal(k[6], (cin, cout), jnp.float32)
        p['bnd'] = _init_bn(k[7], cout)
    return p


def init_backbone_module_params(key, in_channels, out_channels, multi_head, identity=True):
    num_blocks = multi_head - 1 if identity else multi_head   # FiLM heads of shared blocks
    k = jax.random.split(key, 4)
    params = {
        'blocks': [
            init_basic_block_film(k[0], in_channels, out_channels, max(num_blocks, 1)),
            init_basic_block_film(k[1], out_channels, out_channels, max(num_blocks, 1)),
        ],
    }
    if identity:
        params['identity_blocks'] = [
            init_basic_block_film(k[2], in_channels, out_channels, 1),
            init_basic_block_film(k[3], out_channels, out_channels, 1),
        ]
    return params


# ----------------------------------------------------------------------------
if __name__ == "__main__":
    key = jax.random.PRNGKey(0)
    k_param, k_x = jax.random.split(key)

    N, Cin, Cout, H, W = 2, 4, 8, 16, 16
    multi_head = 3        # heads 0,1: shared weights + per-head FiLM; head 2: identity path
    identity = True

    params = init_backbone_module_params(k_param, Cin, Cout, multi_head, identity)
    x = jax.random.normal(k_x, (N, Cin, H, W), jnp.float32)   # NCHW, like PyTorch

    fwd = jax.jit(functools.partial(backbone_module_forward,
                                    multi_head=multi_head, identity=identity))
    outs = fwd(x, params)
    outs = [jax.block_until_ready(o) for o in outs]

    refs = reference_forward(x, params, multi_head, identity)

    assert len(outs) == multi_head
    for o, r in zip(outs, refs):
        assert o.shape == (N, Cout, H, W), o.shape
        assert bool(jnp.all(jnp.isfinite(o)))
        err = float(jnp.max(jnp.abs(o - r) / (1.0 + jnp.abs(r))))
        assert err < 5e-2, f"mismatch vs reference: {err}"
    print("KERNEL_OK")
</pallas_src>

<mosaic_0001>
module attributes {stable_mosaic.version = 11 : i64} {
  func.func @_fused_kernel(%arg0: i32, %arg1: memref<8x512xf32, #tpu.memory_space<vmem>>, %arg2: memref<9x1x512xf32, #tpu.memory_space<vmem>>, %arg3: memref<1x8x72xf32, #tpu.memory_space<vmem>>, %arg4: memref<1x8x1xf32, #tpu.memory_space<vmem>>, %arg5: memref<1x8x8xf32, #tpu.memory_space<vmem>>, %arg6: memref<1x8x1xf32, #tpu.memory_space<vmem>>, %arg7: memref<1x8x72xf32, #tpu.memory_space<vmem>>, %arg8: memref<1x8x1xf32, #tpu.memory_space<vmem>>, %arg9: memref<1x8x72xf32, #tpu.memory_space<vmem>>, %arg10: memref<1x8x1xf32, #tpu.memory_space<vmem>>, %arg11: memref<1x8x72xf32, #tpu.memory_space<vmem>>, %arg12: memref<1x8x1xf32, #tpu.memory_space<vmem>>, %arg13: memref<1x8x512xbf16, #tpu.memory_space<vmem>>, %arg14: memref<72x512xf32, #tpu.memory_space<vmem>>) attributes {dimension_semantics = [#tpu.dimension_semantics<parallel>], iteration_bounds = array<i64: 3>, scalar_prefetch = 0 : i64, scratch_operands = 1 : i64, tpu.core_type = #tpu.core_type<tc>, window_params = [{pipeline_mode = #tpu.pipeline_mode<synchronous>, transform_indices = @transform_0, window_bounds = array<i64: 8, 512>}, {pipeline_mode = #tpu.pipeline_mode<synchronous>, transform_indices = @transform_1, window_bounds = array<i64: 9, 1, 512>}, {transform_indices = @transform_2, window_bounds = array<i64: 1, 8, 72>}, {transform_indices = @transform_3, window_bounds = array<i64: 1, 8, 1>}, {transform_indices = @transform_4, window_bounds = array<i64: 1, 8, 8>}, {transform_indices = @transform_5, window_bounds = array<i64: 1, 8, 1>}, {transform_indices = @transform_6, window_bounds = array<i64: 1, 8, 72>}, {transform_indices = @transform_7, window_bounds = array<i64: 1, 8, 1>}, {transform_indices = @transform_8, window_bounds = array<i64: 1, 8, 72>}, {transform_indices = @transform_9, window_bounds = array<i64: 1, 8, 1>}, {transform_indices = @transform_10, window_bounds = array<i64: 1, 8, 72>}, {transform_indices = @transform_11, window_bounds = array<i64: 1, 8, 1>}, {transform_indices = @transform_12, window_bounds = array<i64: 1, 8, 512>}]} {
    %c0 = arith.constant 0 : index
    %c0_0 = arith.constant 0 : index
    %0 = vector.load %arg1[%c0, %c0_0] : memref<8x512xf32, #tpu.memory_space<vmem>>, vector<8x512xf32>
    %c0_1 = arith.constant 0 : index
    %c0_2 = arith.constant 0 : index
    %c0_3 = arith.constant 0 : index
    %1 = vector.load %arg5[%c0_1, %c0_2, %c0_3] : memref<1x8x8xf32, #tpu.memory_space<vmem>>, vector<1x8x8xf32>
    %2 = vector.shape_cast %1 : vector<1x8x8xf32> to vector<8x8xf32>
    %cst = arith.constant dense<0.000000e+00> : vector<8x512xf32>
    %3 = tpu.matmul %2, %0, %cst {dimension_numbers = #tpu.dot_dimension_numbers<[1], [0], [0], [1], [0, 0, 1, 1], [], []>} : vector<8x8xf32>, vector<8x512xf32>, vector<8x512xf32> -> vector<8x512xf32>
    %c0_4 = arith.constant 0 : index
    %c0_5 = arith.constant 0 : index
    %c0_6 = arith.constant 0 : index
    %4 = vector.load %arg6[%c0_4, %c0_5, %c0_6] : memref<1x8x1xf32, #tpu.memory_space<vmem>>, vector<1x8x1xf32>
    %5 = vector.shape_cast %4 : vector<1x8x1xf32> to vector<8x1xf32>
    %6 = vector.broadcast %5 : vector<8x1xf32> to vector<8x512xf32>
    %7 = arith.addf %3, %6 : vector<8x512xf32>
    %8 = vector.extract_strided_slice %0 {offsets = [0, 495], sizes = [8, 17], strides = [1, 1]} : vector<8x512xf32> to vector<8x17xf32>
    %9 = vector.extract_strided_slice %0 {offsets = [0, 0], sizes = [8, 495], strides = [1, 1]} : vector<8x512xf32> to vector<8x495xf32>
    %10 = tpu.concatenate %8, %9 in 1 : vector<8x17xf32>, vector<8x495xf32> -> vector<8x512xf32>
    %c0_7 = arith.constant 0 : index
    %c0_8 = arith.constant 0 : index
    %c0_9 = arith.constant 0 : index
    %11 = vector.load %arg2[%c0_7, %c0_8, %c0_9] : memref<9x1x512xf32, #tpu.memory_space<vmem>>, vector<1x1x512xf32>
    %12 = vector.shape_cast %11 : vector<1x1x512xf32> to vector<1x512xf32>
    %13 = vector.broadcast %12 : vector<1x512xf32> to vector<8x512xf32>
    %14 = arith.mulf %10, %13 : vector<8x512xf32>
    %c0_10 = arith.constant 0 : index
    %c0_11 = arith.constant 0 : index
    %15 = vector.load %arg14[%c0_10, %c0_11] : memref<72x512xf32, #tpu.memory_space<vmem>>, vector<8x512xf32>
    tpu.vector_store %arg14[%c0_10, %c0_11], %14 {strides = array<i32>} : memref<72x512xf32, #tpu.memory_space<vmem>>, vector<8x512xf32>,
    %16 = vector.extract_strided_slice %0 {offsets = [0, 496], sizes = [8, 16], strides = [1, 1]} : vector<8x512xf32> to vector<8x16xf32>
    %17 = vector.extract_strided_slice %0 {offsets = [0, 0], sizes = [8, 496], strides = [1, 1]} : vector<8x512xf32> to vector<8x496xf32>
    %18 = tpu.concatenate %16, %17 in 1 : vector<8x16xf32>, vector<8x496xf32> -> vector<8x512xf32>
    %c1 = arith.constant 1 : index
    %c0_12 = arith.constant 0 : index
    %c0_13 = arith.constant 0 : index
    %19 = vector.load %arg2[%c1, %c0_12, %c0_13] : memref<9x1x512xf32, #tpu.memory_space<vmem>>, vector<1x1x512xf32>
    %20 = vector.shape_cast %19 : vector<1x1x512xf32> to vector<1x512xf32>
    %21 = vector.broadcast %20 : vector<1x512xf32> to vector<8x512xf32>
    %22 = arith.mulf %18, %21 : vector<8x512xf32>
    %c8 = arith.constant 8 : index
    %c0_14 = arith.constant 0 : index
    %23 = vector.load %arg14[%c8, %c0_14] : memref<72x512xf32, #tpu.memory_space<vmem>>, vector<8x512xf32>
    tpu.vector_store %arg14[%c8, %c0_14], %22 {strides = array<i32>} : memref<72x512xf32, #tpu.memory_space<vmem>>, vector<8x512xf32>,
    %24 = vector.extract_strided_slice %0 {offsets = [0, 497], sizes = [8, 15], strides = [1, 1]} : vector<8x512xf32> to vector<8x15xf32>
    %25 = vector.extract_strided_slice %0 {offsets = [0, 0], sizes = [8, 497], strides = [1, 1]} : vector<8x512xf32> to vector<8x497xf32>
    %26 = tpu.concatenate %24, %25 in 1 : vector<8x15xf32>, vector<8x497xf32> -> vector<8x512xf32>
    %c2 = arith.constant 2 : index
    %c0_15 = arith.constant 0 : index
    %c0_16 = arith.constant 0 : index
    %27 = vector.load %arg2[%c2, %c0_15, %c0_16] : memref<9x1x512xf32, #tpu.memory_space<vmem>>, vector<1x1x512xf32>
    %28 = vector.shape_cast %27 : vector<1x1x512xf32> to vector<1x512xf32>
    %29 = vector.broadcast %28 : vector<1x512xf32> to vector<8x512xf32>
    %30 = arith.mulf %26, %29 : vector<8x512xf32>
    %c16 = arith.constant 16 : index
    %c0_17 = arith.constant 0 : index
    %31 = vector.load %arg14[%c16, %c0_17] : memref<72x512xf32, #tpu.memory_space<vmem>>, vector<8x512xf32>
    tpu.vector_store %arg14[%c16, %c0_17], %30 {strides = array<i32>} : memref<72x512xf32, #tpu.memory_space<vmem>>, vector<8x512xf32>,
    %32 = vector.extract_strided_slice %0 {offsets = [0, 511], sizes = [8, 1], strides = [1, 1]} : vector<8x512xf32> to vector<8x1xf32>
    %33 = vector.extract_strided_slice %0 {offsets = [0, 0], sizes = [8, 511], strides = [1, 1]} : vector<8x512xf32> to vector<8x511xf32>
    %34 = tpu.concatenate %32, %33 in 1 : vector<8x1xf32>, vector<8x511xf32> -> vector<8x512xf32>
    %c3 = arith.constant 3 : index
    %c0_18 = arith.constant 0 : index
    %c0_19 = arith.constant 0 : index
    %35 = vector.load %arg2[%c3, %c0_18, %c0_19] : memref<9x1x512xf32, #tpu.memory_space<vmem>>, vector<1x1x512xf32>
    %36 = vector.shape_cast %35 : vector<1x1x512xf32> to vector<1x512xf32>
    %37 = vector.broadcast %36 : vector<1x512xf32> to vector<8x512xf32>
    %38 = arith.mulf %34, %37 : vector<8x512xf32>
    %c24 = arith.constant 24 : index
    %c0_20 = arith.constant 0 : index
    %39 = vector.load %arg14[%c24, %c0_20] : memref<72x512xf32, #tpu.memory_space<vmem>>, vector<8x512xf32>
    tpu.vector_store %arg14[%c24, %c0_20], %38 {strides = array<i32>} : memref<72x512xf32, #tpu.memory_space<vmem>>, vector<8x512xf32>,
    %c32 = arith.constant 32 : index
    %c0_21 = arith.constant 0 : index
    %40 = vector.load %arg14[%c32, %c0_21] : memref<72x512xf32, #tpu.memory_space<vmem>>, vector<8x512xf32>
    tpu.vector_store %arg14[%c32, %c0_21], %0 {strides = array<i32>} : memref<72x512xf32, #tpu.memory_space<vmem>>, vector<8x512xf32>,
    %41 = vector.extract_strided_slice %0 {offsets = [0, 1], sizes = [8, 511], strides = [1, 1]} : vector<8x512xf32> to vector<8x511xf32>
    %42 = vector.extract_strided_slice %0 {offsets = [0, 0], sizes = [8, 1], strides = [1, 1]} : vector<8x512xf32> to vector<8x1xf32>
    %43 = tpu.concatenate %41, %42 in 1 : vector<8x511xf32>, vector<8x1xf32> -> vector<8x512xf32>
    %c5 = arith.constant 5 : index
    %c0_22 = arith.constant 0 : index
    %c0_23 = arith.constant 0 : index
    %44 = vector.load %arg2[%c5, %c0_22, %c0_23] : memref<9x1x512xf32, #tpu.memory_space<vmem>>, vector<1x1x512xf32>
    %45 = vector.shape_cast %44 : vector<1x1x512xf32> to vector<1x512xf32>
    %46 = vector.broadcast %45 : vector<1x512xf32> to vector<8x512xf32>
    %47 = arith.mulf %43, %46 : vector<8x512xf32>
    %c40 = arith.constant 40 : index
    %c0_24 = arith.constant 0 : index
    %48 = vector.load %arg14[%c40, %c0_24] : memref<72x512xf32, #tpu.memory_space<vmem>>, vector<8x512xf32>
    tpu.vector_store %arg14[%c40, %c0_24], %47 {strides = array<i32>} : memref<72x512xf32, #tpu.memory_space<vmem>>, vector<8x512xf32>,
    %49 = vector.extract_strided_slice %0 {offsets = [0, 15], sizes = [8, 497], strides = [1, 1]} : vector<8x512xf32> to vector<8x497xf32>
    %50 = vector.extract_strided_slice %0 {offsets = [0, 0], sizes = [8, 15], strides = [1, 1]} : vector<8x512xf32> to vector<8x15xf32>
    %51 = tpu.concatenate %49, %50 in 1 : vector<8x497xf32>, vector<8x15xf32> -> vector<8x512xf32>
    %c6 = arith.constant 6 : index
    %c0_25 = arith.constant 0 : index
    %c0_26 = arith.constant 0 : index
    %52 = vector.load %arg2[%c6, %c0_25, %c0_26] : memref<9x1x512xf32, #tpu.memory_space<vmem>>, vector<1x1x512xf32>
    %53 = vector.shape_cast %52 : vector<1x1x512xf32> to vector<1x512xf32>
    %54 = vector.broadcast %53 : vector<1x512xf32> to vector<8x512xf32>
    %55 = arith.mulf %51, %54 : vector<8x512xf32>
    %c48 = arith.constant 48 : index
    %c0_27 = arith.constant 0 : index
    %56 = vector.load %arg14[%c48, %c0_27] : memref<72x512xf32, #tpu.memory_space<vmem>>, vector<8x512xf32>
    tpu.vector_store %arg14[%c48, %c0_27], %55 {strides = array<i32>} : memref<72x512xf32, #tpu.memory_space<vmem>>, vector<8x512xf32>,
    %57 = vector.extract_strided_slice %0 {offsets = [0, 16], sizes = [8, 496], strides = [1, 1]} : vector<8x512xf32> to vector<8x496xf32>
    %58 = vector.extract_strided_slice %0 {offsets = [0, 0], sizes = [8, 16], strides = [1, 1]} : vector<8x512xf32> to vector<8x16xf32>
    %59 = tpu.concatenate %57, %58 in 1 : vector<8x496xf32>, vector<8x16xf32> -> vector<8x512xf32>
    %c7 = arith.constant 7 : index
    %c0_28 = arith.constant 0 : index
    %c0_29 = arith.constant 0 : index
    %60 = vector.load %arg2[%c7, %c0_28, %c0_29] : memref<9x1x512xf32, #tpu.memory_space<vmem>>, vector<1x1x512xf32>
    %61 = vector.shape_cast %60 : vector<1x1x512xf32> to vector<1x512xf32>
    %62 = vector.broadcast %61 : vector<1x512xf32> to vector<8x512xf32>
    %63 = arith.mulf %59, %62 : vector<8x512xf32>
    %c56 = arith.constant 56 : index
    %c0_30 = arith.constant 0 : index
    %64 = vector.load %arg14[%c56, %c0_30] : memref<72x512xf32, #tpu.memory_space<vmem>>, vector<8x512xf32>
    tpu.vector_store %arg14[%c56, %c0_30], %63 {strides = array<i32>} : memref<72x512xf32, #tpu.memory_space<vmem>>, vector<8x512xf32>,
    %65 = vector.extract_strided_slice %0 {offsets = [0, 17], sizes = [8, 495], strides = [1, 1]} : vector<8x512xf32> to vector<8x495xf32>
    %66 = vector.extract_strided_slice %0 {offsets = [0, 0], sizes = [8, 17], strides = [1, 1]} : vector<8x512xf32> to vector<8x17xf32>
    %67 = tpu.concatenate %65, %66 in 1 : vector<8x495xf32>, vector<8x17xf32> -> vector<8x512xf32>
    %c8_31 = arith.constant 8 : index
    %c0_32 = arith.constant 0 : index
    %c0_33 = arith.constant 0 : index
    %68 = vector.load %arg2[%c8_31, %c0_32, %c0_33] : memref<9x1x512xf32, #tpu.memory_space<vmem>>, vector<1x1x512xf32>
    %69 = vector.shape_cast %68 : vector<1x1x512xf32> to vector<1x512xf32>
    %70 = vector.broadcast %69 : vector<1x512xf32> to vector<8x512xf32>
    %71 = arith.mulf %67, %70 : vector<8x512xf32>
    %c64 = arith.constant 64 : index
    %c0_34 = arith.constant 0 : index
    %72 = vector.load %arg14[%c64, %c0_34] : memref<72x512xf32, #tpu.memory_space<vmem>>, vector<8x512xf32>
    tpu.vector_store %arg14[%c64, %c0_34], %71 {strides = array<i32>} : memref<72x512xf32, #tpu.memory_space<vmem>>, vector<8x512xf32>,
    %c0_35 = arith.constant 0 : index
    %c0_36 = arith.constant 0 : index
    %c0_37 = arith.constant 0 : index
    %73 = vector.load %arg3[%c0_35, %c0_36, %c0_37] : memref<1x8x72xf32, #tpu.memory_space<vmem>>, vector<1x8x72xf32>
    %74 = vector.shape_cast %73 : vector<1x8x72xf32> to vector<8x72xf32>
    %c0_38 = arith.constant 0 : index
    %c0_39 = arith.constant 0 : index
    %75 = vector.load %arg14[%c0_38, %c0_39] : memref<72x512xf32, #tpu.memory_space<vmem>>, vector<72x512xf32>
    %cst_40 = arith.constant dense<0.000000e+00> : vector<8x512xf32>
    %76 = tpu.matmul %74, %75, %cst_40 {dimension_numbers = #tpu.dot_dimension_numbers<[1], [0], [0], [1], [0, 0, 1, 1], [], []>} : vector<8x72xf32>, vector<72x512xf32>, vector<8x512xf32> -> vector<8x512xf32>
    %c0_41 = arith.constant 0 : index
    %c0_42 = arith.constant 0 : index
    %c0_43 = arith.constant 0 : index
    %77 = vector.load %arg4[%c0_41, %c0_42, %c0_43] : memref<1x8x1xf32, #tpu.memory_space<vmem>>, vector<1x8x1xf32>
    %78 = vector.shape_cast %77 : vector<1x8x1xf32> to vector<8x1xf32>
    %79 = vector.broadcast %78 : vector<8x1xf32> to vector<8x512xf32>
    %80 = arith.addf %76, %79 : vector<8x512xf32>
    %cst_44 = arith.constant 0.000000e+00 : f32
    %81 = vector.broadcast %cst_44 : f32 to vector<8x512xf32>
    %82 = arith.maximumf %80, %81 : vector<8x512xf32>
    %83 = vector.extract_strided_slice %82 {offsets = [0, 495], sizes = [8, 17], strides = [1, 1]} : vector<8x512xf32> to vector<8x17xf32>
    %84 = vector.extract_strided_slice %82 {offsets = [0, 0], sizes = [8, 495], strides = [1, 1]} : vector<8x512xf32> to vector<8x495xf32>
    %85 = tpu.concatenate %83, %84 in 1 : vector<8x17xf32>, vector<8x495xf32> -> vector<8x512xf32>
    %c0_45 = arith.constant 0 : index
    %c0_46 = arith.constant 0 : index
    %c0_47 = arith.constant 0 : index
    %86 = vector.load %arg2[%c0_45, %c0_46, %c0_47] : memref<9x1x512xf32, #tpu.memory_space<vmem>>, vector<1x1x512xf32>
    %87 = vector.shape_cast %86 : vector<1x1x512xf32> to vector<1x512xf32>
    %88 = vector.broadcast %87 : vector<1x512xf32> to vector<8x512xf32>
    %89 = arith.mulf %85, %88 : vector<8x512xf32>
    %c0_48 = arith.constant 0 : index
    %c0_49 = arith.constant 0 : index
    %90 = vector.load %arg14[%c0_48, %c0_49] : memref<72x512xf32, #tpu.memory_space<vmem>>, vector<8x512xf32>
    tpu.vector_store %arg14[%c0_48, %c0_49], %89 {strides = array<i32>} : memref<72x512xf32, #tpu.memory_space<vmem>>, vector<8x512xf32>,
    %91 = vector.extract_strided_slice %82 {offsets = [0, 496], sizes = [8, 16], strides = [1, 1]} : vector<8x512xf32> to vector<8x16xf32>
    %92 = vector.extract_strided_slice %82 {offsets = [0, 0], sizes = [8, 496], strides = [1, 1]} : vector<8x512xf32> to vector<8x496xf32>
    %93 = tpu.concatenate %91, %92 in 1 : vector<8x16xf32>, vector<8x496xf32> -> vector<8x512xf32>
    %c1_50 = arith.constant 1 : index
    %c0_51 = arith.constant 0 : index
    %c0_52 = arith.constant 0 : index
    %94 = vector.load %arg2[%c1_50, %c0_51, %c0_52] : memref<9x1x512xf32, #tpu.memory_space<vmem>>, vector<1x1x512xf32>
    %95 = vector.shape_cast %94 : vector<1x1x512xf32> to vector<1x512xf32>
    %96 = vector.broadcast %95 : vector<1x512xf32> to vector<8x512xf32>
    %97 = arith.mulf %93, %96 : vector<8x512xf32>
    %c8_53 = arith.constant 8 : index
    %c0_54 = arith.constant 0 : index
    %98 = vector.load %arg14[%c8_53, %c0_54] : memref<72x512xf32, #tpu.memory_space<vmem>>, vector<8x512xf32>
    tpu.vector_store %arg14[%c8_53, %c0_54], %97 {strides = array<i32>} : memref<72x512xf32, #tpu.memory_space<vmem>>, vector<8x512xf32>,
    %99 = vector.extract_strided_slice %82 {offsets = [0, 497], sizes = [8, 15], strides = [1, 1]} : vector<8x512xf32> to vector<8x15xf32>
    %100 = vector.extract_strided_slice %82 {offsets = [0, 0], sizes = [8, 497], strides = [1, 1]} : vector<8x512xf32> to vector<8x497xf32>
    %101 = tpu.concatenate %99, %100 in 1 : vector<8x15xf32>, vector<8x497xf32> -> vector<8x512xf32>
    %c2_55 = arith.constant 2 : index
    %c0_56 = arith.constant 0 : index
    %c0_57 = arith.constant 0 : index
    %102 = vector.load %arg2[%c2_55, %c0_56, %c0_57] : memref<9x1x512xf32, #tpu.memory_space<vmem>>, vector<1x1x512xf32>
    %103 = vector.shape_cast %102 : vector<1x1x512xf32> to vector<1x512xf32>
    %104 = vector.broadcast %103 : vector<1x512xf32> to vector<8x512xf32>
    %105 = arith.mulf %101, %104 : vector<8x512xf32>
    %c16_58 = arith.constant 16 : index
    %c0_59 = arith.constant 0 : index
    %106 = vector.load %arg14[%c16_58, %c0_59] : memref<72x512xf32, #tpu.memory_space<vmem>>, vector<8x512xf32>
    tpu.vector_store %arg14[%c16_58, %c0_59], %105 {strides = array<i32>} : memref<72x512xf32, #tpu.memory_space<vmem>>, vector<8x512xf32>,
    %107 = vector.extract_strided_slice %82 {offsets = [0, 511], sizes = [8, 1], strides = [1, 1]} : vector<8x512xf32> to vector<8x1xf32>
    %108 = vector.extract_strided_slice %82 {offsets = [0, 0], sizes = [8, 511], strides = [1, 1]} : vector<8x512xf32> to vector<8x511xf32>
    %109 = tpu.concatenate %107, %108 in 1 : vector<8x1xf32>, vector<8x511xf32> -> vector<8x512xf32>
    %c3_60 = arith.constant 3 : index
    %c0_61 = arith.constant 0 : index
    %c0_62 = arith.constant 0 : index
    %110 = vector.load %arg2[%c3_60, %c0_61, %c0_62] : memref<9x1x512xf32, #tpu.memory_space<vmem>>, vector<1x1x512xf32>
    %111 = vector.shape_cast %110 : vector<1x1x512xf32> to vector<1x512xf32>
    %112 = vector.broadcast %111 : vector<1x512xf32> to vector<8x512xf32>
    %113 = arith.mulf %109, %112 : vector<8x512xf32>
    %c24_63 = arith.constant 24 : index
    %c0_64 = arith.constant 0 : index
    %114 = vector.load %arg14[%c24_63, %c0_64] : memref<72x512xf32, #tpu.memory_space<vmem>>, vector<8x512xf32>
    tpu.vector_store %arg14[%c24_63, %c0_64], %113 {strides = array<i32>} : memref<72x512xf32, #tpu.memory_space<vmem>>, vector<8x512xf32>,
    %c32_65 = arith.constant 32 : index
    %c0_66 = arith.constant 0 : index
    %115 = vector.load %arg14[%c32_65, %c0_66] : memref<72x512xf32, #tpu.memory_space<vmem>>, vector<8x512xf32>
    tpu.vector_store %arg14[%c32_65, %c0_66], %82 {strides = array<i32>} : memref<72x512xf32, #tpu.memory_space<vmem>>, vector<8x512xf32>,
    %116 = vector.extract_strided_slice %82 {offsets = [0, 1], sizes = [8, 511], strides = [1, 1]} : vector<8x512xf32> to vector<8x511xf32>
    %117 = vector.extract_strided_slice %82 {offsets = [0, 0], sizes = [8, 1], strides = [1, 1]} : vector<8x512xf32> to vector<8x1xf32>
    %118 = tpu.concatenate %116, %117 in 1 : vector<8x511xf32>, vector<8x1xf32> -> vector<8x512xf32>
    %c5_67 = arith.constant 5 : index
    %c0_68 = arith.constant 0 : index
    %c0_69 = arith.constant 0 : index
    %119 = vector.load %arg2[%c5_67, %c0_68, %c0_69] : memref<9x1x512xf32, #tpu.memory_space<vmem>>, vector<1x1x512xf32>
    %120 = vector.shape_cast %119 : vector<1x1x512xf32> to vector<1x512xf32>
    %121 = vector.broadcast %120 : vector<1x512xf32> to vector<8x512xf32>
    %122 = arith.mulf %118, %121 : vector<8x512xf32>
    %c40_70 = arith.constant 40 : index
    %c0_71 = arith.constant 0 : index
    %123 = vector.load %arg14[%c40_70, %c0_71] : memref<72x512xf32, #tpu.memory_space<vmem>>, vector<8x512xf32>
    tpu.vector_store %arg14[%c40_70, %c0_71], %122 {strides = array<i32>} : memref<72x512xf32, #tpu.memory_space<vmem>>, vector<8x512xf32>,
    %124 = vector.extract_strided_slice %82 {offsets = [0, 15], sizes = [8, 497], strides = [1, 1]} : vector<8x512xf32> to vector<8x497xf32>
    %125 = vector.extract_strided_slice %82 {offsets = [0, 0], sizes = [8, 15], strides = [1, 1]} : vector<8x512xf32> to vector<8x15xf32>
    %126 = tpu.concatenate %124, %125 in 1 : vector<8x497xf32>, vector<8x15xf32> -> vector<8x512xf32>
    %c6_72 = arith.constant 6 : index
    %c0_73 = arith.constant 0 : index
    %c0_74 = arith.constant 0 : index
    %127 = vector.load %arg2[%c6_72, %c0_73, %c0_74] : memref<9x1x512xf32, #tpu.memory_space<vmem>>, vector<1x1x512xf32>
    %128 = vector.shape_cast %127 : vector<1x1x512xf32> to vector<1x512xf32>
    %129 = vector.broadcast %128 : vector<1x512xf32> to vector<8x512xf32>
    %130 = arith.mulf %126, %129 : vector<8x512xf32>
    %c48_75 = arith.constant 48 : index
    %c0_76 = arith.constant 0 : index
    %131 = vector.load %arg14[%c48_75, %c0_76] : memref<72x512xf32, #tpu.memory_space<vmem>>, vector<8x512xf32>
    tpu.vector_store %arg14[%c48_75, %c0_76], %130 {strides = array<i32>} : memref<72x512xf32, #tpu.memory_space<vmem>>, vector<8x512xf32>,
    %132 = vector.extract_strided_slice %82 {offsets = [0, 16], sizes = [8, 496], strides = [1, 1]} : vector<8x512xf32> to vector<8x496xf32>
    %133 = vector.extract_strided_slice %82 {offsets = [0, 0], sizes = [8, 16], strides = [1, 1]} : vector<8x512xf32> to vector<8x16xf32>
    %134 = tpu.concatenate %132, %133 in 1 : vector<8x496xf32>, vector<8x16xf32> -> vector<8x512xf32>
    %c7_77 = arith.constant 7 : index
    %c0_78 = arith.constant 0 : index
    %c0_79 = arith.constant 0 : index
    %135 = vector.load %arg2[%c7_77, %c0_78, %c0_79] : memref<9x1x512xf32, #tpu.memory_space<vmem>>, vector<1x1x512xf32>
    %136 = vector.shape_cast %135 : vector<1x1x512xf32> to vector<1x512xf32>
    %137 = vector.broadcast %136 : vector<1x512xf32> to vector<8x512xf32>
    %138 = arith.mulf %134, %137 : vector<8x512xf32>
    %c56_80 = arith.constant 56 : index
    %c0_81 = arith.constant 0 : index
    %139 = vector.load %arg14[%c56_80, %c0_81] : memref<72x512xf32, #tpu.memory_space<vmem>>, vector<8x512xf32>
    tpu.vector_store %arg14[%c56_80, %c0_81], %138 {strides = array<i32>} : memref<72x512xf32, #tpu.memory_space<vmem>>, vector<8x512xf32>,
    %140 = vector.extract_strided_slice %82 {offsets = [0, 17], sizes = [8, 495], strides = [1, 1]} : vector<8x512xf32> to vector<8x495xf32>
    %141 = vector.extract_strided_slice %82 {offsets = [0, 0], sizes = [8, 17], strides = [1, 1]} : vector<8x512xf32> to vector<8x17xf32>
    %142 = tpu.concatenate %140, %141 in 1 : vector<8x495xf32>, vector<8x17xf32> -> vector<8x512xf32>
    %c8_82 = arith.constant 8 : index
    %c0_83 = arith.constant 0 : index
    %c0_84 = arith.constant 0 : index
    %143 = vector.load %arg2[%c8_82, %c0_83, %c0_84] : memref<9x1x512xf32, #tpu.memory_space<vmem>>, vector<1x1x512xf32>
    %144 = vector.shape_cast %143 : vector<1x1x512xf32> to vector<1x512xf32>
    %145 = vector.broadcast %144 : vector<1x512xf32> to vector<8x512xf32>
    %146 = arith.mulf %142, %145 : vector<8x512xf32>
    %c64_85 = arith.constant 64 : index
    %c0_86 = arith.constant 0 : index
    %147 = vector.load %arg14[%c64_85, %c0_86] : memref<72x512xf32, #tpu.memory_space<vmem>>, vector<8x512xf32>
    tpu.vector_store %arg14[%c64_85, %c0_86], %146 {strides = array<i32>} : memref<72x512xf32, #tpu.memory_space<vmem>>, vector<8x512xf32>,
    %c0_87 = arith.constant 0 : index
    %c0_88 = arith.constant 0 : index
    %c0_89 = arith.constant 0 : index
    %148 = vector.load %arg7[%c0_87, %c0_88, %c0_89] : memref<1x8x72xf32, #tpu.memory_space<vmem>>, vector<1x8x72xf32>
    %149 = vector.shape_cast %148 : vector<1x8x72xf32> to vector<8x72xf32>
    %c0_90 = arith.constant 0 : index
    %c0_91 = arith.constant 0 : index
    %150 = vector.load %arg14[%c0_90, %c0_91] : memref<72x512xf32, #tpu.memory_space<vmem>>, vector<72x512xf32>
    %cst_92 = arith.constant dense<0.000000e+00> : vector<8x512xf32>
    %151 = tpu.matmul %149, %150, %cst_92 {dimension_numbers = #tpu.dot_dimension_numbers<[1], [0], [0], [1], [0, 0, 1, 1], [], []>} : vector<8x72xf32>, vector<72x512xf32>, vector<8x512xf32> -> vector<8x512xf32>
    %c0_93 = arith.constant 0 : index
    %c0_94 = arith.constant 0 : index
    %c0_95 = arith.constant 0 : index
    %152 = vector.load %arg8[%c0_93, %c0_94, %c0_95] : memref<1x8x1xf32, #tpu.memory_space<vmem>>, vector<1x8x1xf32>
    %153 = vector.shape_cast %152 : vector<1x8x1xf32> to vector<8x1xf32>
    %154 = vector.broadcast %153 : vector<8x1xf32> to vector<8x512xf32>
    %155 = arith.addf %151, %154 : vector<8x512xf32>
    %156 = arith.addf %155, %7 : vector<8x512xf32>
    %cst_96 = arith.constant 0.000000e+00 : f32
    %157 = vector.broadcast %cst_96 : f32 to vector<8x512xf32>
    %158 = arith.maximumf %156, %157 : vector<8x512xf32>
    %159 = vector.extract_strided_slice %158 {offsets = [0, 495], sizes = [8, 17], strides = [1, 1]} : vector<8x512xf32> to vector<8x17xf32>
    %160 = vector.extract_strided_slice %158 {offsets = [0, 0], sizes = [8, 495], strides = [1, 1]} : vector<8x512xf32> to vector<8x495xf32>
    %161 = tpu.concatenate %159, %160 in 1 : vector<8x17xf32>, vector<8x495xf32> -> vector<8x512xf32>
    %c0_97 = arith.constant 0 : index
    %c0_98 = arith.constant 0 : index
    %c0_99 = arith.constant 0 : index
    %162 = vector.load %arg2[%c0_97, %c0_98, %c0_99] : memref<9x1x512xf32, #tpu.memory_space<vmem>>, vector<1x1x512xf32>
    %163 = vector.shape_cast %162 : vector<1x1x512xf32> to vector<1x512xf32>
    %164 = vector.broadcast %163 : vector<1x512xf32> to vector<8x512xf32>
    %165 = arith.mulf %161, %164 : vector<8x512xf32>
    %c0_100 = arith.constant 0 : index
    %c0_101 = arith.constant 0 : index
    %166 = vector.load %arg14[%c0_100, %c0_101] : memref<72x512xf32, #tpu.memory_space<vmem>>, vector<8x512xf32>
    tpu.vector_store %arg14[%c0_100, %c0_101], %165 {strides = array<i32>} : memref<72x512xf32, #tpu.memory_space<vmem>>, vector<8x512xf32>,
    %167 = vector.extract_strided_slice %158 {offsets = [0, 496], sizes = [8, 16], strides = [1, 1]} : vector<8x512xf32> to vector<8x16xf32>
    %168 = vector.extract_strided_slice %158 {offsets = [0, 0], sizes = [8, 496], strides = [1, 1]} : vector<8x512xf32> to vector<8x496xf32>
    %169 = tpu.concatenate %167, %168 in 1 : vector<8x16xf32>, vector<8x496xf32> -> vector<8x512xf32>
    %c1_102 = arith.constant 1 : index
    %c0_103 = arith.constant 0 : index
    %c0_104 = arith.constant 0 : index
    %170 = vector.load %arg2[%c1_102, %c0_103, %c0_104] : memref<9x1x512xf32, #tpu.memory_space<vmem>>, vector<1x1x512xf32>
    %171 = vector.shape_cast %170 : vector<1x1x512xf32> to vector<1x512xf32>
    %172 = vector.broadcast %171 : vector<1x512xf32> to vector<8x512xf32>
    %173 = arith.mulf %169, %172 : vector<8x512xf32>
    %c8_105 = arith.constant 8 : index
    %c0_106 = arith.constant 0 : index
    %174 = vector.load %arg14[%c8_105, %c0_106] : memref<72x512xf32, #tpu.memory_space<vmem>>, vector<8x512xf32>
    tpu.vector_store %arg14[%c8_105, %c0_106], %173 {strides = array<i32>} : memref<72x512xf32, #tpu.memory_space<vmem>>, vector<8x512xf32>,
    %175 = vector.extract_strided_slice %158 {offsets = [0, 497], sizes = [8, 15], strides = [1, 1]} : vector<8x512xf32> to vector<8x15xf32>
    %176 = vector.extract_strided_slice %158 {offsets = [0, 0], sizes = [8, 497], strides = [1, 1]} : vector<8x512xf32> to vector<8x497xf32>
    %177 = tpu.concatenate %175, %176 in 1 : vector<8x15xf32>, vector<8x497xf32> -> vector<8x512xf32>
    %c2_107 = arith.constant 2 : index
    %c0_108 = arith.constant 0 : index
    %c0_109 = arith.constant 0 : index
    %178 = vector.load %arg2[%c2_107, %c0_108, %c0_109] : memref<9x1x512xf32, #tpu.memory_space<vmem>>, vector<1x1x512xf32>
    %179 = vector.shape_cast %178 : vector<1x1x512xf32> to vector<1x512xf32>
    %180 = vector.broadcast %179 : vector<1x512xf32> to vector<8x512xf32>
    %181 = arith.mulf %177, %180 : vector<8x512xf32>
    %c16_110 = arith.constant 16 : index
    %c0_111 = arith.constant 0 : index
    %182 = vector.load %arg14[%c16_110, %c0_111] : memref<72x512xf32, #tpu.memory_space<vmem>>, vector<8x512xf32>
    tpu.vector_store %arg14[%c16_110, %c0_111], %181 {strides = array<i32>} : memref<72x512xf32, #tpu.memory_space<vmem>>, vector<8x512xf32>,
    %183 = vector.extract_strided_slice %158 {offsets = [0, 511], sizes = [8, 1], strides = [1, 1]} : vector<8x512xf32> to vector<8x1xf32>
    %184 = vector.extract_strided_slice %158 {offsets = [0, 0], sizes = [8, 511], strides = [1, 1]} : vector<8x512xf32> to vector<8x511xf32>
    %185 = tpu.concatenate %183, %184 in 1 : vector<8x1xf32>, vector<8x511xf32> -> vector<8x512xf32>
    %c3_112 = arith.constant 3 : index
    %c0_113 = arith.constant 0 : index
    %c0_114 = arith.constant 0 : index
    %186 = vector.load %arg2[%c3_112, %c0_113, %c0_114] : memref<9x1x512xf32, #tpu.memory_space<vmem>>, vector<1x1x512xf32>
    %187 = vector.shape_cast %186 : vector<1x1x512xf32> to vector<1x512xf32>
    %188 = vector.broadcast %187 : vector<1x512xf32> to vector<8x512xf32>
    %189 = arith.mulf %185, %188 : vector<8x512xf32>
    %c24_115 = arith.constant 24 : index
    %c0_116 = arith.constant 0 : index
    %190 = vector.load %arg14[%c24_115, %c0_116] : memref<72x512xf32, #tpu.memory_space<vmem>>, vector<8x512xf32>
    tpu.vector_store %arg14[%c24_115, %c0_116], %189 {strides = array<i32>} : memref<72x512xf32, #tpu.memory_space<vmem>>, vector<8x512xf32>,
    %c32_117 = arith.constant 32 : index
    %c0_118 = arith.constant 0 : index
    %191 = vector.load %arg14[%c32_117, %c0_118] : memref<72x512xf32, #tpu.memory_space<vmem>>, vector<8x512xf32>
    tpu.vector_store %arg14[%c32_117, %c0_118], %158 {strides = array<i32>} : memref<72x512xf32, #tpu.memory_space<vmem>>, vector<8x512xf32>,
    %192 = vector.extract_strided_slice %158 {offsets = [0, 1], sizes = [8, 511], strides = [1, 1]} : vector<8x512xf32> to vector<8x511xf32>
    %193 = vector.extract_strided_slice %158 {offsets = [0, 0], sizes = [8, 1], strides = [1, 1]} : vector<8x512xf32> to vector<8x1xf32>
    %194 = tpu.concatenate %192, %193 in 1 : vector<8x511xf32>, vector<8x1xf32> -> vector<8x512xf32>
    %c5_119 = arith.constant 5 : index
    %c0_120 = arith.constant 0 : index
    %c0_121 = arith.constant 0 : index
    %195 = vector.load %arg2[%c5_119, %c0_120, %c0_121] : memref<9x1x512xf32, #tpu.memory_space<vmem>>, vector<1x1x512xf32>
    %196 = vector.shape_cast %195 : vector<1x1x512xf32> to vector<1x512xf32>
    %197 = vector.broadcast %196 : vector<1x512xf32> to vector<8x512xf32>
    %198 = arith.mulf %194, %197 : vector<8x512xf32>
    %c40_122 = arith.constant 40 : index
    %c0_123 = arith.constant 0 : index
    %199 = vector.load %arg14[%c40_122, %c0_123] : memref<72x512xf32, #tpu.memory_space<vmem>>, vector<8x512xf32>
    tpu.vector_store %arg14[%c40_122, %c0_123], %198 {strides = array<i32>} : memref<72x512xf32, #tpu.memory_space<vmem>>, vector<8x512xf32>,
    %200 = vector.extract_strided_slice %158 {offsets = [0, 15], sizes = [8, 497], strides = [1, 1]} : vector<8x512xf32> to vector<8x497xf32>
    %201 = vector.extract_strided_slice %158 {offsets = [0, 0], sizes = [8, 15], strides = [1, 1]} : vector<8x512xf32> to vector<8x15xf32>
    %202 = tpu.concatenate %200, %201 in 1 : vector<8x497xf32>, vector<8x15xf32> -> vector<8x512xf32>
    %c6_124 = arith.constant 6 : index
    %c0_125 = arith.constant 0 : index
    %c0_126 = arith.constant 0 : index
    %203 = vector.load %arg2[%c6_124, %c0_125, %c0_126] : memref<9x1x512xf32, #tpu.memory_space<vmem>>, vector<1x1x512xf32>
    %204 = vector.shape_cast %203 : vector<1x1x512xf32> to vector<1x512xf32>
    %205 = vector.broadcast %204 : vector<1x512xf32> to vector<8x512xf32>
    %206 = arith.mulf %202, %205 : vector<8x512xf32>
    %c48_127 = arith.constant 48 : index
    %c0_128 = arith.constant 0 : index
    %207 = vector.load %arg14[%c48_127, %c0_128] : memref<72x512xf32, #tpu.memory_space<vmem>>, vector<8x512xf32>
    tpu.vector_store %arg14[%c48_127, %c0_128], %206 {strides = array<i32>} : memref<72x512xf32, #tpu.memory_space<vmem>>, vector<8x512xf32>,
    %208 = vector.extract_strided_slice %158 {offsets = [0, 16], sizes = [8, 496], strides = [1, 1]} : vector<8x512xf32> to vector<8x496xf32>
    %209 = vector.extract_strided_slice %158 {offsets = [0, 0], sizes = [8, 16], strides = [1, 1]} : vector<8x512xf32> to vector<8x16xf32>
    %210 = tpu.concatenate %208, %209 in 1 : vector<8x496xf32>, vector<8x16xf32> -> vector<8x512xf32>
    %c7_129 = arith.constant 7 : index
    %c0_130 = arith.constant 0 : index
    %c0_131 = arith.constant 0 : index
    %211 = vector.load %arg2[%c7_129, %c0_130, %c0_131] : memref<9x1x512xf32, #tpu.memory_space<vmem>>, vector<1x1x512xf32>
    %212 = vector.shape_cast %211 : vector<1x1x512xf32> to vector<1x512xf32>
    %213 = vector.broadcast %212 : vector<1x512xf32> to vector<8x512xf32>
    %214 = arith.mulf %210, %213 : vector<8x512xf32>
    %c56_132 = arith.constant 56 : index
    %c0_133 = arith.constant 0 : index
    %215 = vector.load %arg14[%c56_132, %c0_133] : memref<72x512xf32, #tpu.memory_space<vmem>>, vector<8x512xf32>
    tpu.vector_store %arg14[%c56_132, %c0_133], %214 {strides = array<i32>} : memref<72x512xf32, #tpu.memory_space<vmem>>, vector<8x512xf32>,
    %216 = vector.extract_strided_slice %158 {offsets = [0, 17], sizes = [8, 495], strides = [1, 1]} : vector<8x512xf32> to vector<8x495xf32>
    %217 = vector.extract_strided_slice %158 {offsets = [0, 0], sizes = [8, 17], strides = [1, 1]} : vector<8x512xf32> to vector<8x17xf32>
    %218 = tpu.concatenate %216, %217 in 1 : vector<8x495xf32>, vector<8x17xf32> -> vector<8x512xf32>
    %c8_134 = arith.constant 8 : index
    %c0_135 = arith.constant 0 : index
    %c0_136 = arith.constant 0 : index
    %219 = vector.load %arg2[%c8_134, %c0_135, %c0_136] : memref<9x1x512xf32, #tpu.memory_space<vmem>>, vector<1x1x512xf32>
    %220 = vector.shape_cast %219 : vector<1x1x512xf32> to vector<1x512xf32>
    %221 = vector.broadcast %220 : vector<1x512xf32> to vector<8x512xf32>
    %222 = arith.mulf %218, %221 : vector<8x512xf32>
    %c64_137 = arith.constant 64 : index
    %c0_138 = arith.constant 0 : index
    %223 = vector.load %arg14[%c64_137, %c0_138] : memref<72x512xf32, #tpu.memory_space<vmem>>, vector<8x512xf32>
    tpu.vector_store %arg14[%c64_137, %c0_138], %222 {strides = array<i32>} : memref<72x512xf32, #tpu.memory_space<vmem>>, vector<8x512xf32>,
    %c0_139 = arith.constant 0 : index
    %c0_140 = arith.constant 0 : index
    %c0_141 = arith.constant 0 : index
    %224 = vector.load %arg9[%c0_139, %c0_140, %c0_141] : memref<1x8x72xf32, #tpu.memory_space<vmem>>, vector<1x8x72xf32>
    %225 = vector.shape_cast %224 : vector<1x8x72xf32> to vector<8x72xf32>
    %c0_142 = arith.constant 0 : index
    %c0_143 = arith.constant 0 : index
    %226 = vector.load %arg14[%c0_142, %c0_143] : memref<72x512xf32, #tpu.memory_space<vmem>>, vector<72x512xf32>
    %cst_144 = arith.constant dense<0.000000e+00> : vector<8x512xf32>
    %227 = tpu.matmul %225, %226, %cst_144 {dimension_numbers = #tpu.dot_dimension_numbers<[1], [0], [0], [1], [0, 0, 1, 1], [], []>} : vector<8x72xf32>, vector<72x512xf32>, vector<8x512xf32> -> vector<8x512xf32>
    %c0_145 = arith.constant 0 : index
    %c0_146 = arith.constant 0 : index
    %c0_147 = arith.constant 0 : index
    %228 = vector.load %arg10[%c0_145, %c0_146, %c0_147] : memref<1x8x1xf32, #tpu.memory_space<vmem>>, vector<1x8x1xf32>
    %229 = vector.shape_cast %228 : vector<1x8x1xf32> to vector<8x1xf32>
    %230 = vector.broadcast %229 : vector<8x1xf32> to vector<8x512xf32>
    %231 = arith.addf %227, %230 : vector<8x512xf32>
    %cst_148 = arith.constant 0.000000e+00 : f32
    %232 = vector.broadcast %cst_148 : f32 to vector<8x512xf32>
    %233 = arith.maximumf %231, %232 : vector<8x512xf32>
    %234 = vector.extract_strided_slice %233 {offsets = [0, 495], sizes = [8, 17], strides = [1, 1]} : vector<8x512xf32> to vector<8x17xf32>
    %235 = vector.extract_strided_slice %233 {offsets = [0, 0], sizes = [8, 495], strides = [1, 1]} : vector<8x512xf32> to vector<8x495xf32>
    %236 = tpu.concatenate %234, %235 in 1 : vector<8x17xf32>, vector<8x495xf32> -> vector<8x512xf32>
    %c0_149 = arith.constant 0 : index
    %c0_150 = arith.constant 0 : index
    %c0_151 = arith.constant 0 : index
    %237 = vector.load %arg2[%c0_149, %c0_150, %c0_151] : memref<9x1x512xf32, #tpu.memory_space<vmem>>, vector<1x1x512xf32>
    %238 = vector.shape_cast %237 : vector<1x1x512xf32> to vector<1x512xf32>
    %239 = vector.broadcast %238 : vector<1x512xf32> to vector<8x512xf32>
    %240 = arith.mulf %236, %239 : vector<8x512xf32>
    %c0_152 = arith.constant 0 : index
    %c0_153 = arith.constant 0 : index
    %241 = vector.load %arg14[%c0_152, %c0_153] : memref<72x512xf32, #tpu.memory_space<vmem>>, vector<8x512xf32>
    tpu.vector_store %arg14[%c0_152, %c0_153], %240 {strides = array<i32>} : memref<72x512xf32, #tpu.memory_space<vmem>>, vector<8x512xf32>,
    %242 = vector.extract_strided_slice %233 {offsets = [0, 496], sizes = [8, 16], strides = [1, 1]} : vector<8x512xf32> to vector<8x16xf32>
    %243 = vector.extract_strided_slice %233 {offsets = [0, 0], sizes = [8, 496], strides = [1, 1]} : vector<8x512xf32> to vector<8x496xf32>
    %244 = tpu.concatenate %242, %243 in 1 : vector<8x16xf32>, vector<8x496xf32> -> vector<8x512xf32>
    %c1_154 = arith.constant 1 : index
    %c0_155 = arith.constant 0 : index
    %c0_156 = arith.constant 0 : index
    %245 = vector.load %arg2[%c1_154, %c0_155, %c0_156] : memref<9x1x512xf32, #tpu.memory_space<vmem>>, vector<1x1x512xf32>
    %246 = vector.shape_cast %245 : vector<1x1x512xf32> to vector<1x512xf32>
    %247 = vector.broadcast %246 : vector<1x512xf32> to vector<8x512xf32>
    %248 = arith.mulf %244, %247 : vector<8x512xf32>
    %c8_157 = arith.constant 8 : index
    %c0_158 = arith.constant 0 : index
    %249 = vector.load %arg14[%c8_157, %c0_158] : memref<72x512xf32, #tpu.memory_space<vmem>>, vector<8x512xf32>
    tpu.vector_store %arg14[%c8_157, %c0_158], %248 {strides = array<i32>} : memref<72x512xf32, #tpu.memory_space<vmem>>, vector<8x512xf32>,
    %250 = vector.extract_strided_slice %233 {offsets = [0, 497], sizes = [8, 15], strides = [1, 1]} : vector<8x512xf32> to vector<8x15xf32>
    %251 = vector.extract_strided_slice %233 {offsets = [0, 0], sizes = [8, 497], strides = [1, 1]} : vector<8x512xf32> to vector<8x497xf32>
    %252 = tpu.concatenate %250, %251 in 1 : vector<8x15xf32>, vector<8x497xf32> -> vector<8x512xf32>
    %c2_159 = arith.constant 2 : index
    %c0_160 = arith.constant 0 : index
    %c0_161 = arith.constant 0 : index
    %253 = vector.load %arg2[%c2_159, %c0_160, %c0_161] : memref<9x1x512xf32, #tpu.memory_space<vmem>>, vector<1x1x512xf32>
    %254 = vector.shape_cast %253 : vector<1x1x512xf32> to vector<1x512xf32>
    %255 = vector.broadcast %254 : vector<1x512xf32> to vector<8x512xf32>
    %256 = arith.mulf %252, %255 : vector<8x512xf32>
    %c16_162 = arith.constant 16 : index
    %c0_163 = arith.constant 0 : index
    %257 = vector.load %arg14[%c16_162, %c0_163] : memref<72x512xf32, #tpu.memory_space<vmem>>, vector<8x512xf32>
    tpu.vector_store %arg14[%c16_162, %c0_163], %256 {strides = array<i32>} : memref<72x512xf32, #tpu.memory_space<vmem>>, vector<8x512xf32>,
    %258 = vector.extract_strided_slice %233 {offsets = [0, 511], sizes = [8, 1], strides = [1, 1]} : vector<8x512xf32> to vector<8x1xf32>
    %259 = vector.extract_strided_slice %233 {offsets = [0, 0], sizes = [8, 511], strides = [1, 1]} : vector<8x512xf32> to vector<8x511xf32>
    %260 = tpu.concatenate %258, %259 in 1 : vector<8x1xf32>, vector<8x511xf32> -> vector<8x512xf32>
    %c3_164 = arith.constant 3 : index
    %c0_165 = arith.constant 0 : index
    %c0_166 = arith.constant 0 : index
    %261 = vector.load %arg2[%c3_164, %c0_165, %c0_166] : memref<9x1x512xf32, #tpu.memory_space<vmem>>, vector<1x1x512xf32>
    %262 = vector.shape_cast %261 : vector<1x1x512xf32> to vector<1x512xf32>
    %263 = vector.broadcast %262 : vector<1x512xf32> to vector<8x512xf32>
    %264 = arith.mulf %260, %263 : vector<8x512xf32>
    %c24_167 = arith.constant 24 : index
    %c0_168 = arith.constant 0 : index
    %265 = vector.load %arg14[%c24_167, %c0_168] : memref<72x512xf32, #tpu.memory_space<vmem>>, vector<8x512xf32>
    tpu.vector_store %arg14[%c24_167, %c0_168], %264 {strides = array<i32>} : memref<72x512xf32, #tpu.memory_space<vmem>>, vector<8x512xf32>,
    %c32_169 = arith.constant 32 : index
    %c0_170 = arith.constant 0 : index
    %266 = vector.load %arg14[%c32_169, %c0_170] : memref<72x512xf32, #tpu.memory_space<vmem>>, vector<8x512xf32>
    tpu.vector_store %arg14[%c32_169, %c0_170], %233 {strides = array<i32>} : memref<72x512xf32, #tpu.memory_space<vmem>>, vector<8x512xf32>,
    %267 = vector.extract_strided_slice %233 {offsets = [0, 1], sizes = [8, 511], strides = [1, 1]} : vector<8x512xf32> to vector<8x511xf32>
    %268 = vector.extract_strided_slice %233 {offsets = [0, 0], sizes = [8, 1], strides = [1, 1]} : vector<8x512xf32> to vector<8x1xf32>
    %269 = tpu.concatenate %267, %268 in 1 : vector<8x511xf32>, vector<8x1xf32> -> vector<8x512xf32>
    %c5_171 = arith.constant 5 : index
    %c0_172 = arith.constant 0 : index
    %c0_173 = arith.constant 0 : index
    %270 = vector.load %arg2[%c5_171, %c0_172, %c0_173] : memref<9x1x512xf32, #tpu.memory_space<vmem>>, vector<1x1x512xf32>
    %271 = vector.shape_cast %270 : vector<1x1x512xf32> to vector<1x512xf32>
    %272 = vector.broadcast %271 : vector<1x512xf32> to vector<8x512xf32>
    %273 = arith.mulf %269, %272 : vector<8x512xf32>
    %c40_174 = arith.constant 40 : index
    %c0_175 = arith.constant 0 : index
    %274 = vector.load %arg14[%c40_174, %c0_175] : memref<72x512xf32, #tpu.memory_space<vmem>>, vector<8x512xf32>
    tpu.vector_store %arg14[%c40_174, %c0_175], %273 {strides = array<i32>} : memref<72x512xf32, #tpu.memory_space<vmem>>, vector<8x512xf32>,
    %275 = vector.extract_strided_slice %233 {offsets = [0, 15], sizes = [8, 497], strides = [1, 1]} : vector<8x512xf32> to vector<8x497xf32>
    %276 = vector.extract_strided_slice %233 {offsets = [0, 0], sizes = [8, 15], strides = [1, 1]} : vector<8x512xf32> to vector<8x15xf32>
    %277 = tpu.concatenate %275, %276 in 1 : vector<8x497xf32>, vector<8x15xf32> -> vector<8x512xf32>
    %c6_176 = arith.constant 6 : index
    %c0_177 = arith.constant 0 : index
    %c0_178 = arith.constant 0 : index
    %278 = vector.load %arg2[%c6_176, %c0_177, %c0_178] : memref<9x1x512xf32, #tpu.memory_space<vmem>>, vector<1x1x512xf32>
    %279 = vector.shape_cast %278 : vector<1x1x512xf32> to vector<1x512xf32>
    %280 = vector.broadcast %279 : vector<1x512xf32> to vector<8x512xf32>
    %281 = arith.mulf %277, %280 : vector<8x512xf32>
    %c48_179 = arith.constant 48 : index
    %c0_180 = arith.constant 0 : index
    %282 = vector.load %arg14[%c48_179, %c0_180] : memref<72x512xf32, #tpu.memory_space<vmem>>, vector<8x512xf32>
    tpu.vector_store %arg14[%c48_179, %c0_180], %281 {strides = array<i32>} : memref<72x512xf32, #tpu.memory_space<vmem>>, vector<8x512xf32>,
    %283 = vector.extract_strided_slice %233 {offsets = [0, 16], sizes = [8, 496], strides = [1, 1]} : vector<8x512xf32> to vector<8x496xf32>
    %284 = vector.extract_strided_slice %233 {offsets = [0, 0], sizes = [8, 16], strides = [1, 1]} : vector<8x512xf32> to vector<8x16xf32>
    %285 = tpu.concatenate %283, %284 in 1 : vector<8x496xf32>, vector<8x16xf32> -> vector<8x512xf32>
    %c7_181 = arith.constant 7 : index
    %c0_182 = arith.constant 0 : index
    %c0_183 = arith.constant 0 : index
    %286 = vector.load %arg2[%c7_181, %c0_182, %c0_183] : memref<9x1x512xf32, #tpu.memory_space<vmem>>, vector<1x1x512xf32>
    %287 = vector.shape_cast %286 : vector<1x1x512xf32> to vector<1x512xf32>
    %288 = vector.broadcast %287 : vector<1x512xf32> to vector<8x512xf32>
    %289 = arith.mulf %285, %288 : vector<8x512xf32>
    %c56_184 = arith.constant 56 : index
    %c0_185 = arith.constant 0 : index
    %290 = vector.load %arg14[%c56_184, %c0_185] : memref<72x512xf32, #tpu.memory_space<vmem>>, vector<8x512xf32>
    tpu.vector_store %arg14[%c56_184, %c0_185], %289 {strides = array<i32>} : memref<72x512xf32, #tpu.memory_space<vmem>>, vector<8x512xf32>,
    %291 = vector.extract_strided_slice %233 {offsets = [0, 17], sizes = [8, 495], strides = [1, 1]} : vector<8x512xf32> to vector<8x495xf32>
    %292 = vector.extract_strided_slice %233 {offsets = [0, 0], sizes = [8, 17], strides = [1, 1]} : vector<8x512xf32> to vector<8x17xf32>
    %293 = tpu.concatenate %291, %292 in 1 : vector<8x495xf32>, vector<8x17xf32> -> vector<8x512xf32>
    %c8_186 = arith.constant 8 : index
    %c0_187 = arith.constant 0 : index
    %c0_188 = arith.constant 0 : index
    %294 = vector.load %arg2[%c8_186, %c0_187, %c0_188] : memref<9x1x512xf32, #tpu.memory_space<vmem>>, vector<1x1x512xf32>
    %295 = vector.shape_cast %294 : vector<1x1x512xf32> to vector<1x512xf32>
    %296 = vector.broadcast %295 : vector<1x512xf32> to vector<8x512xf32>
    %297 = arith.mulf %293, %296 : vector<8x512xf32>
    %c64_189 = arith.constant 64 : index
    %c0_190 = arith.constant 0 : index
    %298 = vector.load %arg14[%c64_189, %c0_190] : memref<72x512xf32, #tpu.memory_space<vmem>>, vector<8x512xf32>
    tpu.vector_store %arg14[%c64_189, %c0_190], %297 {strides = array<i32>} : memref<72x512xf32, #tpu.memory_space<vmem>>, vector<8x512xf32>,
    %c0_191 = arith.constant 0 : index
    %c0_192 = arith.constant 0 : index
    %c0_193 = arith.constant 0 : index
    %299 = vector.load %arg11[%c0_191, %c0_192, %c0_193] : memref<1x8x72xf32, #tpu.memory_space<vmem>>, vector<1x8x72xf32>
    %300 = vector.shape_cast %299 : vector<1x8x72xf32> to vector<8x72xf32>
    %c0_194 = arith.constant 0 : index
    %c0_195 = arith.constant 0 : index
    %301 = vector.load %arg14[%c0_194, %c0_195] : memref<72x512xf32, #tpu.memory_space<vmem>>, vector<72x512xf32>
    %cst_196 = arith.constant dense<0.000000e+00> : vector<8x512xf32>
    %302 = tpu.matmul %300, %301, %cst_196 {dimension_numbers = #tpu.dot_dimension_numbers<[1], [0], [0], [1], [0, 0, 1, 1], [], []>} : vector<8x72xf32>, vector<72x512xf32>, vector<8x512xf32> -> vector<8x512xf32>
    %c0_197 = arith.constant 0 : index
    %c0_198 = arith.constant 0 : index
    %c0_199 = arith.constant 0 : index
    %303 = vector.load %arg12[%c0_197, %c0_198, %c0_199] : memref<1x8x1xf32, #tpu.memory_space<vmem>>, vector<1x8x1xf32>
    %304 = vector.shape_cast %303 : vector<1x8x1xf32> to vector<8x1xf32>
    %305 = vector.broadcast %304 : vector<8x1xf32> to vector<8x512xf32>
    %306 = arith.addf %302, %305 : vector<8x512xf32>
    %307 = arith.addf %306, %158 : vector<8x512xf32>
    %cst_200 = arith.constant 0.000000e+00 : f32
    %308 = vector.broadcast %cst_200 : f32 to vector<8x512xf32>
    %309 = arith.maximumf %307, %308 : vector<8x512xf32>
    %310 = arith.truncf %309 : vector<8x512xf32> to vector<8x512xbf16>
    %c0_201 = arith.constant 0 : index
    %c0_202 = arith.constant 0 : index
    %c0_203 = arith.constant 0 : index
    %311 = vector.load %arg13[%c0_201, %c0_202, %c0_203] : memref<1x8x512xbf16, #tpu.memory_space<vmem>>, vector<1x8x512xbf16>
    %312 = vector.shape_cast %311 : vector<1x8x512xbf16> to vector<8x512xbf16>
    %313 = vector.shape_cast %310 : vector<8x512xbf16> to vector<1x8x512xbf16>
    tpu.vector_store %arg13[%c0_201, %c0_202, %c0_203], %313 {strides = array<i32>} : memref<1x8x512xbf16, #tpu.memory_space<vmem>>, vector<1x8x512xbf16>,
    return
  }
  func.func @transform_0(%arg0: i32) -> (i32, i32) {
    %c0_i32 = arith.constant 0 : i32
    %c0_i32_0 = arith.constant 0 : i32
    %c0_i32_1 = arith.constant 0 : i32
    return %c0_i32, %c0_i32_0 : i32, i32
  }
  func.func @transform_1(%arg0: i32) -> (i32, i32, i32) {
    %c0_i32 = arith.constant 0 : i32
    %c0_i32_0 = arith.constant 0 : i32
    %c0_i32_1 = arith.constant 0 : i32
    %c0_i32_2 = arith.constant 0 : i32
    return %c0_i32, %c0_i32_0, %c0_i32_1 : i32, i32, i32
  }
  func.func @transform_2(%arg0: i32) -> (i32, i32, i32) {
    %c0_i32 = arith.constant 0 : i32
    %c0_i32_0 = arith.constant 0 : i32
    %c0_i32_1 = arith.constant 0 : i32
    return %arg0, %c0_i32, %c0_i32_0 : i32, i32, i32
  }
  func.func @transform_3(%arg0: i32) -> (i32, i32, i32) {
    %c0_i32 = arith.constant 0 : i32
    %c0_i32_0 = arith.constant 0 : i32
    %c0_i32_1 = arith.constant 0 : i32
    return %arg0, %c0_i32, %c0_i32_0 : i32, i32, i32
  }
  func.func @transform_4(%arg0: i32) -> (i32, i32, i32) {
    %c0_i32 = arith.constant 0 : i32
    %c0_i32_0 = arith.constant 0 : i32
    %c0_i32_1 = arith.constant 0 : i32
    return %arg0, %c0_i32, %c0_i32_0 : i32, i32, i32
  }
  func.func @transform_5(%arg0: i32) -> (i32, i32, i32) {
    %c0_i32 = arith.constant 0 : i32
    %c0_i32_0 = arith.constant 0 : i32
    %c0_i32_1 = arith.constant 0 : i32
    return %arg0, %c0_i32, %c0_i32_0 : i32, i32, i32
  }
  func.func @transform_6(%arg0: i32) -> (i32, i32, i32) {
    %c0_i32 = arith.constant 0 : i32
    %c0_i32_0 = arith.constant 0 : i32
    %c0_i32_1 = arith.constant 0 : i32
    return %arg0, %c0_i32, %c0_i32_0 : i32, i32, i32
  }
  func.func @transform_7(%arg0: i32) -> (i32, i32, i32) {
    %c0_i32 = arith.constant 0 : i32
    %c0_i32_0 = arith.constant 0 : i32
    %c0_i32_1 = arith.constant 0 : i32
    return %arg0, %c0_i32, %c0_i32_0 : i32, i32, i32
  }
  func.func @transform_8(%arg0: i32) -> (i32, i32, i32) {
    %c0_i32 = arith.constant 0 : i32
    %c0_i32_0 = arith.constant 0 : i32
    %c0_i32_1 = arith.constant 0 : i32
    return %arg0, %c0_i32, %c0_i32_0 : i32, i32, i32
  }
  func.func @transform_9(%arg0: i32) -> (i32, i32, i32) {
    %c0_i32 = arith.constant 0 : i32
    %c0_i32_0 = arith.constant 0 : i32
    %c0_i32_1 = arith.constant 0 : i32
    return %arg0, %c0_i32, %c0_i32_0 : i32, i32, i32
  }
  func.func @transform_10(%arg0: i32) -> (i32, i32, i32) {
    %c0_i32 = arith.constant 0 : i32
    %c0_i32_0 = arith.constant 0 : i32
    %c0_i32_1 = arith.constant 0 : i32
    return %arg0, %c0_i32, %c0_i32_0 : i32, i32, i32
  }
  func.func @transform_11(%arg0: i32) -> (i32, i32, i32) {
    %c0_i32 = arith.constant 0 : i32
    %c0_i32_0 = arith.constant 0 : i32
    %c0_i32_1 = arith.constant 0 : i32
    return %arg0, %c0_i32, %c0_i32_0 : i32, i32, i32
  }
  func.func @transform_12(%arg0: i32) -> (i32, i32, i32) {
    %c0_i32 = arith.constant 0 : i32
    %c0_i32_0 = arith.constant 0 : i32
    %c0_i32_1 = arith.constant 0 : i32
    return %arg0, %c0_i32, %c0_i32_0 : i32, i32, i32
  }
}

</mosaic_0001>

<bundles_post_ra>
// kernel: backbone_module_forward.1
= control target key start
LH: loop header
LB: loop body
LE: loop exit
PB: predicated region body
PF: predicated region fallthrough
CT: control target
= control target key end

     0   :  { %s3395_s21 = smov 0   ;;  %s4353_s0 = inlined_call_operand.vmem [shape: f32[8,512], index: 0, kind: input, shape index: {}]   ;;  %s4354_s1 = inlined_call_operand.vmem [shape: f32[9,1,512], index: 1, kind: input, shape index: {}]   ;;  %s4355_s2 = inlined_call_operand.vmem [shape: f32[3,8,72], index: 2, kind: input, shape index: {}]   ;;  %s4356_s3 = inlined_call_operand.vmem [shape: f32[3,8,1], index: 3, kind: input, shape index: {}]   ;;  %s4357_s4 = inlined_call_operand.vmem [shape: f32[3,8,8], index: 4, kind: input, shape index: {}]   ;;  %s4358_s5 = inlined_call_operand.vmem [shape: f32[3,8,1], index: 5, kind: input, shape index: {}]   ;;  %s4359_s6 = inlined_call_operand.vmem [shape: f32[3,8,72], index: 6, kind: input, shape index: {}]   ;;  %s4360_s7 = inlined_call_operand.vmem [shape: f32[3,8,1], index: 7, kind: input, shape index: {}]   ;;  %s4361_s8 = inlined_call_operand.vmem [shape: f32[3,8,72], index: 8, kind: input, shape index: {}]   ;;  %s4362_s9 = inlined_call_operand.vmem [shape: f32[3,8,1], index: 9, kind: input, shape index: {}]   ;;  %s4363_s10 = inlined_call_operand.vmem [shape: f32[3,8,72], index: 10, kind: input, shape index: {}]   ;;  %s4364_s11 = inlined_call_operand.vmem [shape: f32[3,8,1], index: 11, kind: input, shape index: {}]   ;;  %s4365_s12 = inlined_call_operand.vmem [shape: bf16[3,8,512], index: 12, kind: output, shape index: {}]  }
   0x1 LB: > { %s3230_s22 = sadd.s32 4294967295, %s3318_s21   ;;  %p3234_p0 = scmp.ge.s32.totalorder %s3318_s21, 1  ;;  %s3318_s21 = sphi %s3395_s21, %s22_s21  }
   0x2   : > { %p442_p1 = scmp.lt.s32.totalorder %s3318_s21, 4 }
   0x4   : > { %p443_p2 = pnand %p3234_p0, %p442_p1 }
   0x5   : > { %s3320_s27 = smov (!%p443_p2), 111   ;;  %p519_p3 = scmp.lt.s32.totalorder (!%p443_p2), %s3230_s22, 2 }
   0x6   : > { %446 = sbr.rel (%p443_p2) target bundleno = 1529 (0x5f9), region = 68  ;;  %s3322_s15 = smov (!%p443_p2), 112  }
   0x7   : > { %s3323_s19 = smov (!%p443_p2), 113   ;;  %s3324_s20 = smov (!%p443_p2), 127  }
   0x8   : > { %s3325_s23 = smov (!%p443_p2), 1   ;;  %s3326_s24 = smov (!%p443_p2), 15  }
   0x9   : > { %s3327_s25 = smov (!%p443_p2), 16   ;;  %s3329_s26 = smov (!%p443_p2), 17  }
   0xb   : > { %v3406_v0 = vld [vmem:[%s4353_s0 + $0x10] sm:$0xff]  ;;  %v3411_v1 = vld [vmem:[%s4353_s0] sm:$0xff]  ;;  %v3420_v2 = vld [vmem:[%s4353_s0 + $0x18] sm:$0xff]  ;;  %v3321_v4 = vmov 0.0   ;;  %s4367_s22 = smov (!%p519_p3, %s3230_s22), 2  ;;  %vm575_vm0 = vcmask 64512   ;;  %v745_v8 = vlaneseq }
   0xc   : > { %1075 = vrot.lane.b32.xlu1 %v3406_v0, %s3320_s27  ;;  %1071 = vrot.lane.b32.xlu0 %v3411_v1, %s3320_s27  ;;  %v3425_v3 = vld [vmem:[%s4353_s0 + $0x8] sm:$0xff]  ;;  %s3440_s14 = sshll.u32 %s4367_s22, 3  ;;  %v3328_v6 = vmov 0   ;;  %v3255_v14 = vld [vmem:[%s4354_s1 + $0x20] sm:$0xf]  ;;  %vm1079_vm1 = vcmask 908288  }
   0xd   : > { %609 = vmatprep.subr.mxu0 %v3425_v3  ;;  %680 = vmatprep.subr.mxu1 %v3420_v2  ;;  %s530_s18 = scalar_lea.vmem %s4357_s4, %s3440_s14  ;;  %s526_s30 = scalar_lea.vmem %s4356_s3, %s3440_s14  ;;  %v746_v9 = vshrl.u32 %v745_v8, 7  ;;  %v3254_v32 = vld [vmem:[%s4354_s1 + $0x1c] sm:$0xf]  ;;  %vm1030_vm2 = vcmask 916480   ;;  %v3253_v49 = vld [vmem:[%s4354_s1 + $0x18] sm:$0xf] }
   0xe   : > { %610 = vmatpush1.msra.mxu0 %v3411_v1  ;;  %681 = vmatpush1.msra.mxu1 %v3406_v0  ;;  %v568_v5 = vld [vmem:[%s530_s18] sm:$0xff]  ;;  %vm981_vm3 = vcmask 924672   ;;  %vm932_vm4 = vcmask 1039360   ;;  %vm880_vm5 = vcmask 7168   ;;  %vm831_vm6 = vcmask 121856   ;;  %s522_s28 = scalar_lea.vmem %s4355_s2, %s3440_s14  ;;  %s534_s13 = scalar_lea.vmem %s4358_s5, %s3440_s14 }
   0xf   : > { %643 = vmatprep.mubr.f32.mxu0 %v3321_v4  ;;  %714 = vmatprep.mubr.f32.mxu1 %v3321_v4  ;;  %v1157_v7 = vld [vmem:[%s526_s30] sm:$0xff]  ;;  %v3508_v10 = vsub.s32 2, %v746_v9  ;;  %v3510_v11 = vsub.s32 0, %v746_v9  ;;  %v3512_v12 = vsub.s32 3, %v746_v9  ;;  %v3514_v13 = vsub.s32 1, %v746_v9  ;;  %s542_s18 = scalar_lea.vmem %s4360_s7, %s3440_s14  ;;  %s538_s16 = scalar_lea.vmem %s4359_s6, %s3440_s14 }
  0x10   : > { %1077 = vrot.lane.b32.xlu1 %v3420_v2, %s3320_s27  ;;  %1073 = vrot.lane.b32.xlu0 %v3425_v3, %s3320_s27  ;;  %vm782_vm7 = vcmask 130048   ;;  %vm734_vm8 = vcmask 138240   ;;  %vm1163_vm9 = vcmask 588800   ;;  %s546_s17 = scalar_lea.vmem %s4361_s8, %s3440_s14 }
  0x11   : > { %3247 = vmatmul.mubr.msk.f32.vlgmr.msra.gmra.mxu0 %vm575_vm0, %v568_v5  ;;  %3248 = vmatmul.mubr.msk.f32.vlgmr.msra.gmra.mxu1 %vm575_vm0, %v568_v5  ;;  %v1103_v17 = vrot.slane %v3255_v14, %v3508_v10  ;;  %v1095_v18 = vrot.slane %v3255_v14, %v3510_v11  ;;  %v1107_v19 = vrot.slane %v3255_v14, %v3512_v12 }
  0x12   : > { %1231 = vmatprep.mubr.f32.mxu0 %v3321_v4  ;;  %1302 = vmatprep.mubr.f32.mxu1 %v3321_v4  ;;  %v1099_v20 = vrot.slane %v3255_v14, %v3514_v13  ;;  %v1054_v34 = vrot.slane %v3254_v32, %v3508_v10  ;;  %v1050_v35 = vrot.slane %v3254_v32, %v3514_v13 }
  0x13   : > { %3310 = vset.pattern.permute.xlu0 %v3328_v6  ;;  %3311 = vset.pattern.permute.xlu1 %v3328_v6  ;;  %v1058_v36 = vrot.slane %v3254_v32, %v3512_v12  ;;  %v1046_v37 = vrot.slane %v3254_v32, %v3510_v11  ;;  %v1005_v51 = vrot.slane %v3253_v49, %v3508_v10 }
  0x14   : > { %1024 = vrot.lane.b32.xlu1 %v3425_v3, %s3322_s15  ;;  %1022 = vrot.lane.b32.xlu0 %v3411_v1, %s3322_s15  ;;  %v1001_v52 = vrot.slane %v3253_v49, %v3514_v13  ;;  %v1009_v53 = vrot.slane %v3253_v49, %v3512_v12  ;;  %v997_v54 = vrot.slane %v3253_v49, %v3510_v11 }
  0x18   : > { %1028 = vrot.lane.b32.xlu1 %v3420_v2, %s3322_s15  ;;  %1026 = vrot.lane.b32.xlu0 %v3406_v0, %s3322_s15 }
  0x1c   : > { %975 = vrot.lane.b32.xlu1 %v3425_v3, %s3323_s19  ;;  %973 = vrot.lane.b32.xlu0 %v3411_v1, %s3323_s19 }
  0x20   : > { %979 = vrot.lane.b32.xlu1 %v3420_v2, %s3323_s19  ;;  %977 = vrot.lane.b32.xlu0 %v3406_v0, %s3323_s19 }
  0x24   : > { %926 = vrot.lane.b32.xlu1 %v3425_v3, %s3324_s20  ;;  %924 = vrot.lane.b32.xlu0 %v3411_v1, %s3324_s20 }
  0x28   : > { %930 = vrot.lane.b32.xlu1 %v3420_v2, %s3324_s20  ;;  %928 = vrot.lane.b32.xlu0 %v3406_v0, %s3324_s20 }
  0x2c   : > { %874 = vrot.lane.b32.xlu1 %v3411_v1, %s3325_s23  ;;  %871 = vrot.lane.b32.xlu0 %v3420_v2, %s3325_s23 }
  0x30   : > { %878 = vrot.lane.b32.xlu1 %v3406_v0, %s3325_s23  ;;  %876 = vrot.lane.b32.xlu0 %v3425_v3, %s3325_s23 }
  0x34   : > { %825 = vrot.lane.b32.xlu1 %v3411_v1, %s3326_s24  ;;  %822 = vrot.lane.b32.xlu0 %v3420_v2, %s3326_s24 }
  0x38   : > { %829 = vrot.lane.b32.xlu1 %v3406_v0, %s3326_s24  ;;  %827 = vrot.lane.b32.xlu0 %v3425_v3, %s3326_s24 }
  0x3c   : > { %776 = vrot.lane.b32.xlu1 %v3411_v1, %s3327_s25  ;;  %773 = vrot.lane.b32.xlu0 %v3420_v2, %s3327_s25 }
  0x40   : > { %780 = vrot.lane.b32.xlu1 %v3406_v0, %s3327_s25  ;;  %778 = vrot.lane.b32.xlu0 %v3425_v3, %s3327_s25 }
  0x44   : > { %728 = vrot.lane.b32.xlu1 %v3411_v1, %s3329_s26  ;;  %722 = vrot.lane.b32.xlu0 %v3420_v2, %s3329_s26 }
  0x48   : > { %732 = vrot.lane.b32.xlu1 %v3406_v0, %s3329_s26  ;;  %730 = vrot.lane.b32.xlu0 %v3425_v3, %s3329_s26 }
  0x4c   : > { %1160 = vperm.xlu0 %3310, %v1157_v7   ;;  %v3252_v7 = vld [vmem:[%s4354_s1 + $0x14] sm:$0xf] }
  0x4d   : > { %v956_v9 = vrot.slane %v3252_v7, %v3508_v10  ;;  %v952_v14 = vrot.slane %v3252_v7, %v3514_v13 }
  0x7e   : > { %v1076_v15 = vpop.permute.xlu1 %1075  ;;  %v1072_v16 = vpop.permute.xlu0 %1071 }
  0x82   : > { %v1078_v21 = vpop.permute.xlu1 %1077  ;;  %v1074_v22 = vpop.permute.xlu0 %1073 }
  0x83   : > { %v1082_v23 = vsel %vm1079_vm1, %v1076_v15, %v1078_v21  ;;  %v1088_v24 = vsel %vm1079_vm1, %v1078_v21, %v1072_v16  ;;  %v1080_v25 = vsel %vm1079_vm1, %v1072_v16, %v1074_v22  ;;  %v1081_v26 = vsel %vm1079_vm1, %v1074_v22, %v1076_v15 }
  0x84   : > { %v1114_v27 = vmul.f32 %v1103_v17, %v1082_v23  ;;  %v1112_v28 = vmul.f32 %v1095_v18, %v1080_v25  ;;  %v1115_v29 = vmul.f32 %v1107_v19, %v1088_v24  ;;  %v1113_v30 = vmul.f32 %v1099_v20, %v1081_v26 }
  0x85   : > { %v960_v15 = vrot.slane %v3252_v7, %v3512_v12  ;;  %v948_v16 = vrot.slane %v3252_v7, %v3510_v11 }
  0x86   : > { %v1025_v31 = vpop.permute.xlu1 %1024  ;;  %1252 = vmatprep.subr.mxu1 %v1115_v29  ;;  %v1023_v33 = vpop.permute.xlu0 %1022  ;;  %1181 = vmatprep.subr.mxu0 %v1113_v30 }
  0x87   : > { %1182 = vmatpush1.msra.mxu0 %v1112_v28  ;;  %1253 = vmatpush1.msra.mxu1 %v1114_v27  ;;  %v1031_v38 = vsel %vm1030_vm2, %v1023_v33, %v1025_v31  ;;  %v3251_v28 = vld [vmem:[%s4354_s1 + $0xc] sm:$0xf] }
  0x88   : > { %v1063_v47 = vmul.f32 %v1046_v37, %v1031_v38  ;;  %v903_v30 = vrot.slane %v3251_v28, %v3508_v10  ;;  %v907_v32 = vrot.slane %v3251_v28, %v3512_v12 }
  0x8a   : > { %v1029_v39 = vpop.permute.xlu1 %1028  ;;  %v1027_v40 = vpop.permute.xlu0 %1026 }
  0x8b   : > { %v1039_v41 = vsel %vm1030_vm2, %v1029_v39, %v1023_v33  ;;  %v1032_v42 = vsel %vm1030_vm2, %v1025_v31, %v1027_v40  ;;  %v1033_v43 = vsel %vm1030_vm2, %v1027_v40, %v1029_v39  ;;  %v899_v31 = vrot.slane %v3251_v28, %v3514_v13 }
  0x8c   : > { %v1065_v44 = vmul.f32 %v1054_v34, %v1033_v43  ;;  %v1064_v45 = vmul.f32 %v1050_v35, %v1032_v42  ;;  %v1066_v46 = vmul.f32 %v1058_v36, %v1039_v41  ;;  %v895_v33 = vrot.slane %v3251_v28, %v3510_v11 }
  0x8e   : > { %v976_v48 = vpop.permute.xlu1 %975  ;;  %v974_v50 = vpop.permute.xlu0 %973  ;;  %1183 = vmatprep.subr.mxu0 %v1064_v45  ;;  %1254 = vmatprep.subr.mxu1 %v1066_v46 }
  0x8f   : > { %1184 = vmatpush1.msra.mxu0 %v1063_v47  ;;  %1255 = vmatpush1.msra.mxu1 %v1065_v44  ;;  %v982_v55 = vsel %vm981_vm3, %v974_v50, %v976_v48 }
  0x90   : > { %v1014_v5 = vmul.f32 %v997_v54, %v982_v55 }
  0x92   : > { %v980_v56 = vpop.permute.xlu1 %979  ;;  %v978_v57 = vpop.permute.xlu0 %977 }
  0x93   : > { %v990_v58 = vsel %vm981_vm3, %v980_v56, %v974_v50  ;;  %v983_v59 = vsel %vm981_vm3, %v976_v48, %v978_v57  ;;  %v984_v60 = vsel %vm981_vm3, %v978_v57, %v980_v56 }
  0x94   : > { %v1016_v61 = vmul.f32 %v1005_v51, %v984_v60  ;;  %v1015_v62 = vmul.f32 %v1001_v52, %v983_v59  ;;  %v1017_v63 = vmul.f32 %v1009_v53, %v990_v58  ;;  %v3249_v58 = vld [vmem:[%s4354_s1 + $0x4] sm:$0xf] }
  0x95   : > { %v805_v60 = vrot.slane %v3249_v58, %v3508_v10 }
  0x96   : > { %v927_v6 = vpop.permute.xlu1 %926  ;;  %v925_v8 = vpop.permute.xlu0 %924  ;;  %1185 = vmatprep.subr.mxu0 %v1015_v62  ;;  %1256 = vmatprep.subr.mxu1 %v1017_v63  ;;  %v809_v62 = vrot.slane %v3249_v58, %v3512_v12  ;;  %v797_v63 = vrot.slane %v3249_v58, %v3510_v11 }
  0x97   : > { %1186 = vmatpush1.msra.mxu0 %v1014_v5  ;;  %1257 = vmatpush1.msra.mxu1 %v1016_v61  ;;  %v933_v17 = vsel %vm932_vm4, %v925_v8, %v927_v6  ;;  %v801_v61 = vrot.slane %v3249_v58, %v3514_v13 }
  0x98   : > { %v965_v26 = vmul.f32 %v948_v16, %v933_v17 }
  0x9a   : > { %v931_v18 = vpop.permute.xlu1 %930  ;;  %v929_v19 = vpop.permute.xlu0 %928 }
  0x9b   : > { %v941_v20 = vsel %vm932_vm4, %v931_v18, %v925_v8  ;;  %v934_v21 = vsel %vm932_vm4, %v927_v6, %v929_v19  ;;  %v935_v22 = vsel %vm932_vm4, %v929_v19, %v931_v18 }
  0x9c   : > { %v967_v23 = vmul.f32 %v956_v9, %v935_v22  ;;  %v966_v24 = vmul.f32 %v952_v14, %v934_v21  ;;  %v968_v25 = vmul.f32 %v960_v15, %v941_v20  ;;  %v743_v20 = vld [vmem:[%s4354_s1] sm:$0xf] }
  0x9d   : > { %v756_v22 = vrot.slane %v743_v20, %v3508_v10 }
  0x9e   : > { %v875_v27 = vpop.permute.xlu1 %874  ;;  %v872_v29 = vpop.permute.xlu0 %871  ;;  %1187 = vmatprep.subr.mxu0 %v966_v24  ;;  %1258 = vmatprep.subr.mxu1 %v968_v25  ;;  %v760_v24 = vrot.slane %v743_v20, %v3512_v12  ;;  %v748_v25 = vrot.slane %v743_v20, %v3510_v11 }
  0x9f   : > { %1188 = vmatpush1.msra.mxu0 %v965_v26  ;;  %1259 = vmatpush1.msra.mxu1 %v967_v23  ;;  %v888_v34 = vsel %vm880_vm5, %v872_v29, %v875_v27  ;;  %v752_v23 = vrot.slane %v743_v20, %v3514_v13  ;;  %v3263_v20 = vld [vmem:[%s4354_s1 + $0x1c] sm:$0xf] }
  0xa0   : > { %1189 = vmatprep.subr.mxu0 %v3425_v3  ;;  %1260 = vmatprep.subr.mxu1 %v3420_v2  ;;  %v912_v41 = vmul.f32 %v895_v33, %v888_v34 }
  0xa1   : > { %1190 = vmatpush1.msra.mxu0 %v3411_v1  ;;  %1261 = vmatpush1.msra.mxu1 %v3406_v0  ;;  %v3250_v1 = vld [vmem:[%s4354_s1 + $0x8] sm:$0xf] }
  0xa2   : > { %v879_v35 = vpop.permute.xlu1 %878  ;;  %v877_v36 = vpop.permute.xlu0 %876  ;;  %v854_v43 = vrot.slane %v3250_v1, %v3508_v10  ;;  %v850_v44 = vrot.slane %v3250_v1, %v3514_v13  ;;  %v858_v45 = vrot.slane %v3250_v1, %v3512_v12  ;;  %v846_v46 = vrot.slane %v3250_v1, %v3510_v11 }
  0xa3   : > { %v883_v37 = vsel %vm880_vm5, %v879_v35, %v872_v29  ;;  %v881_v3 = vsel %vm880_vm5, %v875_v27, %v877_v36  ;;  %v882_v2 = vsel %vm880_vm5, %v877_v36, %v879_v35  ;;  %v1120_v36 = vld [vmem:[%s522_s28] sm:$0xff]  ;;  %s550_s28 = scalar_lea.vmem %s4362_s9, %s3440_s14 }
  0xa4   : > { %v914_v38 = vmul.f32 %v903_v30, %v882_v2  ;;  %v913_v39 = vmul.f32 %v899_v31, %v881_v3  ;;  %v915_v40 = vmul.f32 %v907_v32, %v883_v37 }
  0xa6   : > { %v826_v42 = vpop.permute.xlu1 %825  ;;  %v823_v0 = vpop.permute.xlu0 %822  ;;  %1191 = vmatprep.subr.mxu0 %v913_v39  ;;  %1262 = vmatprep.subr.mxu1 %v915_v40 }
  0xa7   : > { %1192 = vmatpush1.msra.mxu0 %v912_v41  ;;  %1263 = vmatpush1.msra.mxu1 %v914_v38  ;;  %v839_v47 = vsel %vm831_vm6, %v823_v0, %v826_v42 }
  0xa8   : > { %v863_v56 = vmul.f32 %v846_v46, %v839_v47 }
  0xaa   : > { %v830_v48 = vpop.permute.xlu1 %829  ;;  %v828_v49 = vpop.permute.xlu0 %827 }
  0xab   : > { %v834_v50 = vsel %vm831_vm6, %v830_v48, %v823_v0  ;;  %v832_v51 = vsel %vm831_vm6, %v826_v42, %v828_v49  ;;  %v833_v52 = vsel %vm831_vm6, %v828_v49, %v830_v48 }
  0xac   : > { %v865_v53 = vmul.f32 %v854_v43, %v833_v52  ;;  %v864_v54 = vmul.f32 %v850_v44, %v832_v51  ;;  %v866_v55 = vmul.f32 %v858_v45, %v834_v50  ;;  %v569_v50 = vld [vmem:[%s534_s13] sm:$0xff] }
  0xad   : > { %v1734_v51 = vld [vmem:[%s542_s18] sm:$0xff] }
  0xae   : > { %v777_v57 = vpop.permute.xlu1 %776  ;;  %v774_v59 = vpop.permute.xlu0 %773  ;;  %1193 = vmatprep.subr.mxu0 %v864_v54  ;;  %1264 = vmatprep.subr.mxu1 %v866_v55 }
  0xaf   : > { %1194 = vmatpush1.msra.mxu0 %v863_v56  ;;  %1265 = vmatpush1.msra.mxu1 %v865_v53  ;;  %v790_v5 = vsel %vm782_vm7, %v774_v59, %v777_v57 }
  0xb0   : > { %v814_v18 = vmul.f32 %v797_v63, %v790_v5 }
  0xb2   : > { %v781_v6 = vpop.permute.xlu1 %780  ;;  %v779_v7 = vpop.permute.xlu0 %778 }
  0xb3   : > { %v785_v8 = vsel %vm782_vm7, %v781_v6, %v774_v59  ;;  %v783_v9 = vsel %vm782_vm7, %v777_v57, %v779_v7  ;;  %v784_v14 = vsel %vm782_vm7, %v779_v7, %v781_v6 }
  0xb4   : > { %v816_v15 = vmul.f32 %v805_v60, %v784_v14  ;;  %v815_v16 = vmul.f32 %v801_v61, %v783_v9  ;;  %v817_v17 = vmul.f32 %v809_v62, %v785_v8  ;;  %v3264_v62 = vld [vmem:[%s4354_s1 + $0x20] sm:$0xf] }
  0xb5   : > { %v1672_v6 = vrot.slane %v3264_v62, %v3510_v11  ;;  %v1676_v7 = vrot.slane %v3264_v62, %v3514_v13 }
  0xb6   : > { %v729_v19 = vpop.permute.xlu1 %728  ;;  %v723_v21 = vpop.permute.xlu0 %722  ;;  %1195 = vmatprep.subr.mxu0 %v815_v16  ;;  %1266 = vmatprep.subr.mxu1 %v817_v17 }
  0xb7   : > { %1196 = vmatpush1.msra.mxu0 %v814_v18  ;;  %1267 = vmatpush1.msra.mxu1 %v816_v15  ;;  %v742_v26 = vsel %vm734_vm8, %v723_v21, %v729_v19  ;;  %v1680_v18 = vrot.slane %v3264_v62, %v3508_v10 }
  0xb8   : > { %v765_v35 = vmul.f32 %v748_v25, %v742_v26 }
  0xba   : > { %v733_v27 = vpop.permute.xlu1 %732  ;;  %v731_v28 = vpop.permute.xlu0 %730 }
  0xbb   : > { %v737_v29 = vsel %vm734_vm8, %v733_v27, %v723_v21  ;;  %v735_v30 = vsel %vm734_vm8, %v729_v19, %v731_v28  ;;  %v736_v31 = vsel %vm734_vm8, %v731_v28, %v733_v27  ;;  %v1684_v19 = vrot.slane %v3264_v62, %v3512_v12 }
  0xbc   : > { %v767_v32 = vmul.f32 %v756_v22, %v736_v31  ;;  %v766_v33 = vmul.f32 %v752_v23, %v735_v30  ;;  %v768_v34 = vmul.f32 %v760_v24, %v737_v29  ;;  %v1625_v27 = vrot.slane %v3263_v20, %v3510_v11 }
  0xbd   : > { %v1629_v28 = vrot.slane %v3263_v20, %v3514_v13 }
  0xbe   : > { %1197 = vmatprep.subr.mxu0 %v766_v33  ;;  %1268 = vmatprep.subr.mxu1 %v768_v34 }
  0xbf   : > { %1198 = vmatpush1.msra.mxu0 %v765_v35  ;;  %1269 = vmatpush1.msra.mxu1 %v767_v32  ;;  %v1633_v35 = vrot.slane %v3263_v20, %v3508_v10 }
  0xc0   : > { %3256 = vmatmul.mubr.msk.f32.vlgmr.msra.gmra.mxu0 %vm1163_vm9, %v1120_v36  ;;  %3257 = vmatmul.mubr.msk.f32.vlgmr.msra.gmra.mxu1 %vm1163_vm9, %v1120_v36  ;;  %v1637_v36 = vrot.slane %v3263_v20, %v3512_v12 }
  0xc1   : > { %1807 = vmatprep.mubr.f32.mxu0 %v3321_v4  ;;  %1878 = vmatprep.mubr.f32.mxu1 %v3321_v4 }
  0xc7   : > { %v1161_v2 = vpop.permute.xlu0 %1160 }
  0xd1   : > { %v3616_v37 = vpop.f32.mrf.mxu0  ;;  %v3618_v3 = vpop.f32.mrf.mxu1 }
  0xd3   : > { %v3620_v38 = vpop.f32.mrf.mxu0  ;;  %v3622_v39 = vpop.f32.mrf.mxu1 }
 0x180   : > { %v1233_v40 = vpop.f32.mrf.mxu0  ;;  %v1304_v41 = vpop.f32.mrf.mxu1 }
 0x181   : > { %v1234_v42 = vadd.f32 %v1233_v40, %v1161_v2  ;;  %v1305_v1 = vadd.f32 %v1304_v41, %v1161_v2 }
 0x182   : > { %v1235_v44 = vpop.f32.mrf.mxu0  ;;  %v1306_v46 = vpop.f32.mrf.mxu1 }
 0x183   : > { %v3624_v0 = vmax.f32 %v1234_v42, 0.0  ;;  %v3626_v43 = vmax.f32 %v1305_v1, 0.0  ;;  %v1236_v45 = vadd.f32 %v1235_v44, %v1161_v2  ;;  %v1307_v48 = vadd.f32 %v1306_v46, %v1161_v2  ;;  %v3262_v2 = vld [vmem:[%s4354_s1 + $0x18] sm:$0xf] }
 0x184   : > { %v1578_v46 = vrot.slane %v3262_v2, %v3510_v11  ;;  %v1586_v62 = vrot.slane %v3262_v2, %v3508_v10 }
 0x185   : > { %1654 = vrot.lane.b32.xlu0 %v3626_v43, %s3320_s27  ;;  %1650 = vrot.lane.b32.xlu1 %v3624_v0, %s3320_s27  ;;  %v3652_v47 = vmax.f32 %v1236_v45, 0.0  ;;  %v3658_v49 = vmax.f32 %v1307_v48, 0.0  ;;  %v1582_v48 = vrot.slane %v3262_v2, %v3514_v13 }
 0x189   : > { %1603 = vrot.lane.b32.xlu0 %v3624_v0, %s3322_s15  ;;  %1461 = vrot.lane.b32.xlu1 %v3624_v0, %s3325_s23 }
 0x18d   : > { %1607 = vrot.lane.b32.xlu0 %v3626_v43, %s3322_s15  ;;  %1465 = vrot.lane.b32.xlu1 %v3626_v43, %s3325_s23 }
 0x191   : > { %1556 = vrot.lane.b32.xlu0 %v3624_v0, %s3323_s19  ;;  %1414 = vrot.lane.b32.xlu1 %v3624_v0, %s3326_s24 }
 0x195   : > { %1560 = vrot.lane.b32.xlu0 %v3626_v43, %s3323_s19  ;;  %1418 = vrot.lane.b32.xlu1 %v3626_v43, %s3326_s24 }
 0x199   : > { %1509 = vrot.lane.b32.xlu0 %v3624_v0, %s3324_s20  ;;  %1367 = vrot.lane.b32.xlu1 %v3624_v0, %s3327_s25 }
 0x19d   : > { %1513 = vrot.lane.b32.xlu0 %v3626_v43, %s3324_s20  ;;  %1652 = vrot.lane.b32.xlu1 %v3652_v47, %s3320_s27 }
 0x1a1   : > { %1458 = vrot.lane.b32.xlu0 %v3658_v49, %s3325_s23  ;;  %1656 = vrot.lane.b32.xlu1 %v3658_v49, %s3320_s27 }
 0x1a5   : > { %1463 = vrot.lane.b32.xlu0 %v3652_v47, %s3325_s23  ;;  %1605 = vrot.lane.b32.xlu1 %v3652_v47, %s3322_s15 }
 0x1a9   : > { %1411 = vrot.lane.b32.xlu0 %v3658_v49, %s3326_s24  ;;  %1609 = vrot.lane.b32.xlu1 %v3658_v49, %s3322_s15 }
 0x1ad   : > { %1416 = vrot.lane.b32.xlu0 %v3652_v47, %s3326_s24  ;;  %1558 = vrot.lane.b32.xlu1 %v3652_v47, %s3323_s19 }
 0x1b1   : > { %1364 = vrot.lane.b32.xlu0 %v3658_v49, %s3327_s25  ;;  %1562 = vrot.lane.b32.xlu1 %v3658_v49, %s3323_s19 }
 0x1b5   : > { %1369 = vrot.lane.b32.xlu0 %v3652_v47, %s3327_s25  ;;  %1511 = vrot.lane.b32.xlu1 %v3652_v47, %s3324_s20 }
 0x1b9   : > { %1314 = vrot.lane.b32.xlu0 %v3658_v49, %s3329_s26  ;;  %1515 = vrot.lane.b32.xlu1 %v3658_v49, %s3324_s20 }
 0x1bd   : > { %1322 = vrot.lane.b32.xlu0 %v3652_v47, %s3329_s26  ;;  %1371 = vrot.lane.b32.xlu1 %v3626_v43, %s3327_s25 }
 0x1c1   : > { %572 = vperm.xlu0 %3310, %v569_v50   ;;  %1320 = vrot.lane.b32.xlu1 %v3624_v0, %s3329_s26 }
 0x1c5   : > { %1324 = vrot.lane.b32.xlu1 %v3626_v43, %s3329_s26 }
 0x1c9   : > { %1737 = vperm.xlu1 %3311, %v1734_v51  }
 0x1f7   : > { %v1655_v52 = vpop.permute.xlu0 %1654  ;;  %v1651_v53 = vpop.permute.xlu1 %1650 }
 0x1fb   : > { %v1604_v54 = vpop.permute.xlu0 %1603  ;;  %v3704_v55 = vpop.permute.xlu1 %1461 }
 0x1ff   : > { %v1608_v56 = vpop.permute.xlu0 %1607  ;;  %v3706_v57 = vpop.permute.xlu1 %1465 }
 0x203   : > { %v3708_v58 = vpop.permute.xlu0 %1556  ;;  %v3710_v59 = vpop.permute.xlu1 %1414 }
 0x207   : > { %v3712_v60 = vpop.permute.xlu0 %1560  ;;  %v3714_v61 = vpop.permute.xlu1 %1418 }
 0x20b   : > { %v3719_v63 = vpop.permute.xlu0 %1509  ;;  %v3721_v5 = vpop.permute.xlu1 %1367 }
 0x20f   : > { %v3725_v8 = vpop.permute.xlu0 %1513  ;;  %v1653_v9 = vpop.permute.xlu1 %1652 }
 0x210   : > { %v1658_v14 = vsel %vm1079_vm1, %v1651_v53, %v1653_v9  ;;  %v1659_v15 = vsel %vm1079_vm1, %v1653_v9, %v1655_v52 }
 0x211   : > { %v1689_v16 = vmul.f32 %v1672_v6, %v1658_v14  ;;  %v1690_v17 = vmul.f32 %v1676_v7, %v1659_v15  ;;  %v1590_v6 = vrot.slane %v3262_v2, %v3512_v12  ;;  %v3261_v7 = vld [vmem:[%s4354_s1 + $0x14] sm:$0xf]  ;;  %v3771_v15 = vld [vmem:[%s4354_s1 + $0xc] sm:$0xf] }
 0x213   : > { %v3734_v21 = vpop.permute.xlu0 %1458  ;;  %1757 = vmatprep.subr.mxu0 %v1690_v17  ;;  %v1657_v22 = vpop.permute.xlu1 %1656 }
 0x214   : > { %v1660_v23 = vsel %vm1079_vm1, %v1655_v52, %v1657_v22  ;;  %v1666_v24 = vsel %vm1079_vm1, %v1657_v22, %v1651_v53  ;;  %1758 = vmatpush1.msra.mxu0 %v1689_v16  ;;  %v1531_v22 = vrot.slane %v3261_v7, %v3510_v11 }
 0x215   : > { %v1691_v25 = vmul.f32 %v1680_v18, %v1660_v23  ;;  %v1692_v26 = vmul.f32 %v1684_v19, %v1666_v24  ;;  %v3780_v18 = vld [vmem:[%s4354_s1 + $0x8] sm:$0xf]  ;;  %v1535_v23 = vrot.slane %v3261_v7, %v3514_v13  ;;  %v1480_v24 = vrot.slane %v3771_v15, %v3510_v11 }
 0x217   : > { %v3740_v29 = vpop.permute.xlu0 %1463  ;;  %1828 = vmatprep.subr.mxu1 %v1692_v26  ;;  %v1606_v30 = vpop.permute.xlu1 %1605 }
 0x218   : > { %v1611_v31 = vsel %vm1030_vm2, %v1604_v54, %v1606_v30  ;;  %v1612_v32 = vsel %vm1030_vm2, %v1606_v30, %v1608_v56  ;;  %1829 = vmatpush1.msra.mxu1 %v1691_v25  ;;  %v3799_v30 = vld [vmem:[%s4354_s1 + $0x4] sm:$0xf]  ;;  %v1467_v2 = vsel %vm880_vm5, %v3704_v55, %v3740_v29 }
 0x219   : > { %v1642_v33 = vmul.f32 %v1625_v27, %v1611_v31  ;;  %v1643_v34 = vmul.f32 %v1629_v28, %v1612_v32  ;;  %v1488_v27 = vrot.slane %v3771_v15, %v3508_v10  ;;  %v1433_v28 = vrot.slane %v3780_v18, %v3510_v11 }
 0x21b   : > { %v3749_v40 = vpop.permute.xlu0 %1411  ;;  %1759 = vmatprep.subr.mxu0 %v1643_v34  ;;  %v1610_v41 = vpop.permute.xlu1 %1609 }
 0x21c   : > { %v1613_v42 = vsel %vm1030_vm2, %v1608_v56, %v1610_v41  ;;  %v1619_v1 = vsel %vm1030_vm2, %v1610_v41, %v1604_v54  ;;  %1760 = vmatpush1.msra.mxu0 %v1642_v33  ;;  %v1445_v41 = vrot.slane %v3780_v18, %v3512_v12 }
 0x21d   : > { %v1644_v44 = vmul.f32 %v1633_v35, %v1613_v42  ;;  %v1645_v45 = vmul.f32 %v1637_v36, %v1619_v1  ;;  %v1539_v35 = vrot.slane %v3261_v7, %v3508_v10  ;;  %v1543_v36 = vrot.slane %v3261_v7, %v3512_v12 }
 0x21e   : > { %v1437_v42 = vrot.slane %v3780_v18, %v3514_v13  ;;  %v1441_v1 = vrot.slane %v3780_v18, %v3508_v10 }
 0x21f   : > { %v3755_v50 = vpop.permute.xlu0 %1416  ;;  %1830 = vmatprep.subr.mxu1 %v1645_v45  ;;  %v1559_v51 = vpop.permute.xlu1 %1558  ;;  %v1386_v45 = vrot.slane %v3799_v30, %v3510_v11 }
 0x220   : > { %v1564_v52 = vsel %vm981_vm3, %v3708_v58, %v1559_v51  ;;  %v1565_v53 = vsel %vm981_vm3, %v1559_v51, %v3712_v60  ;;  %1831 = vmatpush1.msra.mxu1 %v1644_v44  ;;  %v1474_v44 = vsel %vm880_vm5, %v3734_v21, %v3704_v55  ;;  %v1394_v51 = vrot.slane %v3799_v30, %v3508_v10 }
 0x221   : > { %v1595_v56 = vmul.f32 %v1578_v46, %v1564_v52  ;;  %v1596_v54 = vmul.f32 %v1582_v48, %v1565_v53  ;;  %v1390_v46 = vrot.slane %v3799_v30, %v3514_v13  ;;  %v3828_v52 = vld [vmem:[%s4354_s1] sm:$0xf]  ;;  %v1420_v55 = vsel %vm831_vm6, %v3710_v59, %v3755_v50 }
 0x222   : > { %v1451_v18 = vmul.f32 %v1437_v42, %v1420_v55 }
 0x223   : > { %v3766_v9 = vpop.permute.xlu0 %1364  ;;  %1761 = vmatprep.subr.mxu0 %v1596_v54  ;;  %v1563_v14 = vpop.permute.xlu1 %1562  ;;  %v1398_v54 = vrot.slane %v3799_v30, %v3512_v12 }
 0x224   : > { %v1566_v16 = vsel %vm981_vm3, %v3712_v60, %v1563_v14  ;;  %v1572_v17 = vsel %vm981_vm3, %v1563_v14, %v3708_v58  ;;  %1762 = vmatpush1.msra.mxu0 %v1595_v56  ;;  %v1492_v60 = vrot.slane %v3771_v15, %v3512_v12  ;;  %v1484_v58 = vrot.slane %v3771_v15, %v3514_v13 }
 0x225   : > { %v1597_v19 = vmul.f32 %v1586_v62, %v1566_v16  ;;  %v1598_v20 = vmul.f32 %v1590_v6, %v1572_v17  ;;  %v1427_v6 = vsel %vm831_vm6, %v3749_v40, %v3710_v59  ;;  %v1497_v16 = vmul.f32 %v1480_v24, %v1474_v44 }
 0x226   : > { %v1498_v62 = vmul.f32 %v1484_v58, %v1467_v2  ;;  %v1339_v17 = vrot.slane %v3828_v52, %v3510_v11  ;;  %v1468_v59 = vsel %vm880_vm5, %v3740_v29, %v3706_v57 }
 0x227   : > { %v3790_v25 = vpop.permute.xlu0 %1369  ;;  %1832 = vmatprep.subr.mxu1 %v1598_v20  ;;  %v1512_v26 = vpop.permute.xlu1 %1511  ;;  %v1343_v20 = vrot.slane %v3828_v52, %v3514_v13  ;;  %v1499_v29 = vmul.f32 %v1488_v27, %v1468_v59 }
 0x228   : > { %v1517_v31 = vsel %vm932_vm4, %v3719_v63, %v1512_v26  ;;  %v1518_v32 = vsel %vm932_vm4, %v1512_v26, %v3725_v8  ;;  %1833 = vmatpush1.msra.mxu1 %v1597_v19  ;;  %v1422_v19 = vsel %vm831_vm6, %v3714_v61, %v3749_v40 }
 0x229   : > { %v1548_v33 = vmul.f32 %v1531_v22, %v1517_v31  ;;  %v1549_v34 = vmul.f32 %v1535_v23, %v1518_v32  ;;  %v1453_v24 = vmul.f32 %v1445_v41, %v1422_v19  ;;  %v1697_v31 = vld [vmem:[%s538_s16] sm:$0xff] }
 0x22a   : > { %v3273_v19 = vld [vmem:[%s4354_s1 + $0x20] sm:$0xf] }
 0x22b   : > { %1763 = vmatprep.subr.mxu0 %v1549_v34  ;;  %v1516_v48 = vpop.permute.xlu1 %1515  ;;  %v1315_v7 = vpop.permute.xlu0 %1314 }
 0x22c   : > { %v1519_v53 = vsel %vm932_vm4, %v3725_v8, %v1516_v48  ;;  %v1525_v56 = vsel %vm932_vm4, %v1516_v48, %v3719_v63  ;;  %1764 = vmatpush1.msra.mxu0 %v1548_v33  ;;  %v1469_v8 = vsel %vm880_vm5, %v3706_v57, %v3734_v21  ;;  %v1373_v63 = vsel %vm782_vm7, %v3721_v5, %v3790_v25 }
 0x22d   : > { %v1550_v14 = vmul.f32 %v1539_v35, %v1519_v53  ;;  %v1551_v15 = vmul.f32 %v1543_v36, %v1525_v56  ;;  %1765 = vmatprep.subr.mxu0 %v3652_v47  ;;  %v1380_v47 = vsel %vm782_vm7, %v3766_v9, %v3721_v5  ;;  %v1500_v22 = vmul.f32 %v1492_v60, %v1469_v8 }
 0x22e   : > { %1766 = vmatpush1.msra.mxu0 %v3624_v0  ;;  %v1450_v0 = vmul.f32 %v1433_v28, %v1427_v6  ;;  %v1421_v57 = vsel %vm831_vm6, %v3755_v50, %v3714_v61  ;;  %v1404_v5 = vmul.f32 %v1390_v46, %v1373_v63  ;;  %v1403_v23 = vmul.f32 %v1386_v45, %v1380_v47 }
 0x22f   : > { %1767 = vmatprep.subr.mxu0 %v1498_v62  ;;  %1834 = vmatprep.subr.mxu1 %v1551_v15  ;;  %v1372_v21 = vpop.permute.xlu1 %1371  ;;  %v1323_v58 = vpop.permute.xlu0 %1322  ;;  %v1347_v50 = vrot.slane %v3828_v52, %v3508_v10  ;;  %v1351_v28 = vrot.slane %v3828_v52, %v3512_v12 }
 0x230   : > { %1768 = vmatpush1.msra.mxu0 %v1497_v16  ;;  %1835 = vmatpush1.msra.mxu1 %v1550_v14  ;;  %v1375_v40 = vsel %vm782_vm7, %v1372_v21, %v3766_v9  ;;  %v1374_v60 = vsel %vm782_vm7, %v3790_v25, %v1372_v21 }
 0x231   : > { %1769 = vmatprep.subr.mxu0 %v1451_v18  ;;  %1836 = vmatprep.subr.mxu1 %v3658_v49  ;;  %v1452_v49 = vmul.f32 %v1441_v1, %v1421_v57  ;;  %v1406_v26 = vmul.f32 %v1398_v54, %v1375_v40  ;;  %v1405_v30 = vmul.f32 %v1394_v51, %v1374_v60 }
 0x232   : > { %1770 = vmatpush1.msra.mxu0 %v1450_v0  ;;  %1837 = vmatpush1.msra.mxu1 %v3626_v43  ;;  %v2256_v57 = vrot.slane %v3273_v19, %v3514_v13  ;;  %v2260_v60 = vrot.slane %v3273_v19, %v3508_v10 }
 0x233   : > { %1771 = vmatprep.subr.mxu0 %v1404_v5  ;;  %1838 = vmatprep.subr.mxu1 %v1500_v22  ;;  %v1321_v61 = vpop.permute.xlu1 %1320  ;;  %v2252_v22 = vrot.slane %v3273_v19, %v3510_v11 }
 0x234   : > { %v1326_v9 = vsel %vm734_vm8, %v1321_v61, %v1323_v58  ;;  %v1333_v43 = vsel %vm734_vm8, %v1315_v7, %v1321_v61  ;;  %1772 = vmatpush1.msra.mxu0 %v1403_v23  ;;  %1839 = vmatpush1.msra.mxu1 %v1499_v29  ;;  %v2264_v61 = vrot.slane %v3273_v19, %v3512_v12 }
 0x235   : > { %v1356_v27 = vmul.f32 %v1339_v17, %v1333_v43  ;;  %v1357_v25 = vmul.f32 %v1343_v20, %v1326_v9  ;;  %1840 = vmatprep.subr.mxu1 %v1453_v24 }
 0x236   : > { %1841 = vmatpush1.msra.mxu1 %v1452_v49 }
 0x237   : > { %1773 = vmatprep.subr.mxu0 %v1357_v25  ;;  %1842 = vmatprep.subr.mxu1 %v1406_v26  ;;  %v1325_v32 = vpop.permute.xlu1 %1324 }
 0x238   : > { %v1327_v33 = vsel %vm734_vm8, %v1323_v58, %v1325_v32  ;;  %v1328_v34 = vsel %vm734_vm8, %v1325_v32, %v1315_v7  ;;  %1774 = vmatpush1.msra.mxu0 %v1356_v27  ;;  %1843 = vmatpush1.msra.mxu1 %v1405_v30 }
 0x239   : > { %v1358_v35 = vmul.f32 %v1347_v50, %v1327_v33  ;;  %v1359_v36 = vmul.f32 %v1351_v28, %v1328_v34  ;;  %3265 = vmatmul.mubr.msk.f32.vlgmr.msra.gmra.mxu0 %vm1163_vm9, %v1697_v31  ;;  %v3272_v50 = vld [vmem:[%s4354_s1 + $0x1c] sm:$0xf] }
 0x23a   : > { %2387 = vmatprep.mubr.f32.mxu0 %v3321_v4  ;;  %v2205_v28 = vrot.slane %v3272_v50, %v3510_v11  ;;  %v2209_v30 = vrot.slane %v3272_v50, %v3514_v13 }
 0x23b   : > { %1844 = vmatprep.subr.mxu1 %v1359_v36 }
 0x23c   : > { %1845 = vmatpush1.msra.mxu1 %v1358_v35  ;;  %v573_v2 = vpop.permute.xlu0 %572 }
 0x23d   : > { %3266 = vmatmul.mubr.msk.f32.vlgmr.msra.gmra.mxu1 %vm1163_vm9, %v1697_v31  ;;  %v646_v1 = vadd.f32 %v3616_v37, %v573_v2  ;;  %v717_v51 = vadd.f32 %v3618_v3, %v573_v2  ;;  %v648_v54 = vadd.f32 %v3620_v38, %v573_v2  ;;  %v719_v7 = vadd.f32 %v3622_v39, %v573_v2  ;;  %v2314_v39 = vld [vmem:[%s550_s28] sm:$0xff] }
 0x23e   : > { %2458 = vmatprep.mubr.f32.mxu1 %v3321_v4  ;;  %v2213_v2 = vrot.slane %v3272_v50, %v3508_v10 }
 0x244   : > { %v1738_v41 = vpop.permute.xlu1 %1737 }
 0x2f9   : > { %v1809_v42 = vpop.f32.mrf.mxu0 }
 0x2fa   : > { %v1810_v44 = vadd.f32 %v1809_v42, %v1738_v41  ;;  %v3271_v42 = vld [vmem:[%s4354_s1 + $0x18] sm:$0xf] }
 0x2fb   : > { %v1811_v37 = vpop.f32.mrf.mxu0 }
 0x2fc   : > { %v1885_v45 = vadd.f32 %v1810_v44, %v646_v1  ;;  %v1812_v3 = vadd.f32 %v1811_v37, %v1738_v41  ;;  %v2162_v37 = vrot.slane %v3271_v42, %v3514_v13 }
 0x2fd   : > { %v1880_v46 = vpop.f32.mrf.mxu1 }
 0x2fe   : > { %v3889_v48 = vmax.f32 %v1885_v45, 0.0  ;;  %v1881_v52 = vadd.f32 %v1880_v46, %v1738_v41  ;;  %v1886_v62 = vadd.f32 %v1812_v3, %v648_v54 }
 0x2ff   : > { %v1882_v56 = vpop.f32.mrf.mxu1 }
 0x300   : > { %v1887_v55 = vadd.f32 %v1881_v52, %v717_v51  ;;  %2041 = vrot.lane.b32.xlu1 %v3889_v48, %s3325_s23  ;;  %2230 = vrot.lane.b32.xlu0 %v3889_v48, %s3320_s27  ;;  %v1883_v6 = vadd.f32 %v1882_v56, %v1738_v41  ;;  %v3916_v14 = vmax.f32 %v1886_v62, 0.0  ;;  %v2217_v41 = vrot.slane %v3272_v50, %v3512_v12 }
 0x302   : > { %v3896_v53 = vmax.f32 %v1887_v55, 0.0  ;;  %v1888_v15 = vadd.f32 %v1883_v6, %v719_v7  ;;  %v2158_v55 = vrot.slane %v3271_v42, %v3510_v11 }
 0x304   : > { %2045 = vrot.lane.b32.xlu1 %v3896_v53, %s3325_s23  ;;  %2234 = vrot.lane.b32.xlu0 %v3896_v53, %s3320_s27  ;;  %v3922_v38 = vmax.f32 %v1888_v15, 0.0  ;;  %v2166_v15 = vrot.slane %v3271_v42, %v3508_v10 }
 0x308   : > { %1994 = vrot.lane.b32.xlu1 %v3889_v48, %s3326_s24  ;;  %2183 = vrot.lane.b32.xlu0 %v3889_v48, %s3322_s15 }
 0x30c   : > { %1998 = vrot.lane.b32.xlu1 %v3896_v53, %s3326_s24  ;;  %2187 = vrot.lane.b32.xlu0 %v3896_v53, %s3322_s15 }
 0x310   : > { %1947 = vrot.lane.b32.xlu1 %v3889_v48, %s3327_s25  ;;  %2136 = vrot.lane.b32.xlu0 %v3889_v48, %s3323_s19 }
 0x314   : > { %2232 = vrot.lane.b32.xlu1 %v3916_v14, %s3320_s27  ;;  %2140 = vrot.lane.b32.xlu0 %v3896_v53, %s3323_s19 }
 0x318   : > { %2236 = vrot.lane.b32.xlu1 %v3922_v38, %s3320_s27  ;;  %2089 = vrot.lane.b32.xlu0 %v3889_v48, %s3324_s20 }
 0x31c   : > { %2185 = vrot.lane.b32.xlu1 %v3916_v14, %s3322_s15  ;;  %2093 = vrot.lane.b32.xlu0 %v3896_v53, %s3324_s20 }
 0x320   : > { %2189 = vrot.lane.b32.xlu1 %v3922_v38, %s3322_s15  ;;  %2038 = vrot.lane.b32.xlu0 %v3922_v38, %s3325_s23 }
 0x324   : > { %2138 = vrot.lane.b32.xlu1 %v3916_v14, %s3323_s19  ;;  %2043 = vrot.lane.b32.xlu0 %v3916_v14, %s3325_s23 }
 0x328   : > { %2142 = vrot.lane.b32.xlu1 %v3922_v38, %s3323_s19  ;;  %1991 = vrot.lane.b32.xlu0 %v3922_v38, %s3326_s24 }
 0x32c   : > { %2091 = vrot.lane.b32.xlu1 %v3916_v14, %s3324_s20  ;;  %1996 = vrot.lane.b32.xlu0 %v3916_v14, %s3326_s24 }
 0x330   : > { %2095 = vrot.lane.b32.xlu1 %v3922_v38, %s3324_s20  ;;  %1944 = vrot.lane.b32.xlu0 %v3922_v38, %s3327_s25 }
 0x334   : > { %1951 = vrot.lane.b32.xlu1 %v3896_v53, %s3327_s25  ;;  %1949 = vrot.lane.b32.xlu0 %v3916_v14, %s3327_s25 }
 0x338   : > { %1900 = vrot.lane.b32.xlu1 %v3889_v48, %s3329_s26  ;;  %1894 = vrot.lane.b32.xlu0 %v3922_v38, %s3329_s26 }
 0x33c   : > { %1904 = vrot.lane.b32.xlu1 %v3896_v53, %s3329_s26  ;;  %1902 = vrot.lane.b32.xlu0 %v3916_v14, %s3329_s26 }
 0x340   : > { %2317 = vperm.xlu0 %3310, %v2314_v39   ;;  %v2170_v39 = vrot.slane %v3271_v42, %v3512_v12 }
 0x372   : > { %v3968_v8 = vpop.permute.xlu1 %2041  ;;  %v2231_v16 = vpop.permute.xlu0 %2230 }
 0x376   : > { %v3970_v63 = vpop.permute.xlu1 %2045  ;;  %v2235_v17 = vpop.permute.xlu0 %2234 }
 0x37a   : > { %v3972_v59 = vpop.permute.xlu1 %1994  ;;  %v2184_v18 = vpop.permute.xlu0 %2183 }
 0x37e   : > { %v3974_v47 = vpop.permute.xlu1 %1998  ;;  %v2188_v21 = vpop.permute.xlu0 %2187 }
 0x382   : > { %v3979_v0 = vpop.permute.xlu1 %1947  ;;  %v2137_v20 = vpop.permute.xlu0 %2136 }
 0x386   : > { %v2233_v5 = vpop.permute.xlu1 %2232  ;;  %v2141_v29 = vpop.permute.xlu0 %2140 }
 0x387   : > { %v2238_v23 = vsel %vm1079_vm1, %v2231_v16, %v2233_v5  ;;  %v2239_v40 = vsel %vm1079_vm1, %v2233_v5, %v2235_v17 }
 0x388   : > { %v2269_v24 = vmul.f32 %v2252_v22, %v2238_v23  ;;  %v2270_v58 = vmul.f32 %v2256_v57, %v2239_v40 }
 0x38a   : > { %v2237_v49 = vpop.permute.xlu1 %2236  ;;  %2337 = vmatprep.subr.mxu0 %v2270_v58  ;;  %v3990_v9 = vpop.permute.xlu0 %2089  ;;  %v4032_v58 = vld [vmem:[%s4354_s1 + $0x8] sm:$0xf] }
 0x38b   : > { %v2240_v43 = vsel %vm1079_vm1, %v2235_v17, %v2237_v49  ;;  %v2246_v26 = vsel %vm1079_vm1, %v2237_v49, %v2231_v16  ;;  %2338 = vmatpush1.msra.mxu0 %v2269_v24  ;;  %v3270_v16 = vld [vmem:[%s4354_s1 + $0x14] sm:$0xf] }
 0x38c   : > { %v2271_v27 = vmul.f32 %v2260_v60, %v2240_v43  ;;  %v2272_v25 = vmul.f32 %v2264_v61, %v2246_v26  ;;  %v2111_v23 = vrot.slane %v3270_v16, %v3510_v11  ;;  %v2115_v40 = vrot.slane %v3270_v16, %v3514_v13  ;;  %v4045_v43 = vld [vmem:[%s4354_s1 + $0x4] sm:$0xf] }
 0x38d   : > { %v1966_v42 = vrot.slane %v4045_v43, %v3510_v11 }
 0x38e   : > { %v2186_v31 = vpop.permute.xlu1 %2185  ;;  %2408 = vmatprep.subr.mxu1 %v2272_v25  ;;  %v3996_v32 = vpop.permute.xlu0 %2093  ;;  %v2119_v25 = vrot.slane %v3270_v16, %v3508_v10 }
 0x38f   : > { %v2191_v33 = vsel %vm1030_vm2, %v2184_v18, %v2186_v31  ;;  %v2192_v34 = vsel %vm1030_vm2, %v2186_v31, %v2188_v21  ;;  %2409 = vmatpush1.msra.mxu1 %v2271_v27 }
 0x390   : > { %v2222_v35 = vmul.f32 %v2205_v28, %v2191_v33  ;;  %v2223_v36 = vmul.f32 %v2209_v30, %v2192_v34  ;;  %v2123_v28 = vrot.slane %v3270_v16, %v3512_v12  ;;  %v2013_v33 = vrot.slane %v4032_v58, %v3510_v11 }
 0x391   : > { %v2025_v34 = vrot.slane %v4032_v58, %v3512_v12 }
 0x392   : > { %v2190_v1 = vpop.permute.xlu1 %2189  ;;  %2339 = vmatprep.subr.mxu0 %v2223_v36  ;;  %v4005_v44 = vpop.permute.xlu0 %2038  ;;  %v2017_v36 = vrot.slane %v4032_v58, %v3514_v13 }
 0x393   : > { %v2193_v45 = vsel %vm1030_vm2, %v2188_v21, %v2190_v1  ;;  %v2199_v46 = vsel %vm1030_vm2, %v2190_v1, %v2184_v18  ;;  %2340 = vmatpush1.msra.mxu0 %v2222_v35  ;;  %v4021_v21 = vld [vmem:[%s4354_s1 + $0xc] sm:$0xf]  ;;  %v2054_v35 = vsel %vm880_vm5, %v4005_v44, %v3968_v8 }
 0x394   : > { %v2224_v51 = vmul.f32 %v2213_v2, %v2193_v45  ;;  %v2225_v52 = vmul.f32 %v2217_v41, %v2199_v46  ;;  %v2060_v24 = vrot.slane %v4021_v21, %v3510_v11  ;;  %v2064_v61 = vrot.slane %v4021_v21, %v3514_v13 }
 0x395   : > { %v2068_v30 = vrot.slane %v4021_v21, %v3508_v10  ;;  %v2021_v2 = vrot.slane %v4032_v58, %v3508_v10 }
 0x396   : > { %v2139_v3 = vpop.permute.xlu1 %2138  ;;  %2410 = vmatprep.subr.mxu1 %v2225_v52  ;;  %v2044_v56 = vpop.permute.xlu0 %2043 }
 0x397   : > { %v2144_v54 = vsel %vm981_vm3, %v2137_v20, %v2139_v3  ;;  %v2145_v62 = vsel %vm981_vm3, %v2139_v3, %v2141_v29  ;;  %2411 = vmatpush1.msra.mxu1 %v2224_v51  ;;  %v2047_v31 = vsel %vm880_vm5, %v3968_v8, %v2044_v56  ;;  %v1970_v51 = vrot.slane %v4045_v43, %v3514_v13 }
 0x398   : > { %v2175_v6 = vmul.f32 %v2158_v55, %v2144_v54  ;;  %v2176_v7 = vmul.f32 %v2162_v37, %v2145_v62  ;;  %v2078_v52 = vmul.f32 %v2064_v61, %v2047_v31  ;;  %v2049_v54 = vsel %vm880_vm5, %v3970_v63, %v4005_v44 }
 0x399   : > { %v1974_v62 = vrot.slane %v4045_v43, %v3508_v10 }
 0x39a   : > { %v2143_v17 = vpop.permute.xlu1 %2142  ;;  %2341 = vmatprep.subr.mxu0 %v2176_v7  ;;  %v1992_v18 = vpop.permute.xlu0 %1991 }
 0x39b   : > { %v2146_v19 = vsel %vm981_vm3, %v2141_v29, %v2143_v17  ;;  %v2152_v22 = vsel %vm981_vm3, %v2143_v17, %v2137_v20  ;;  %2342 = vmatpush1.msra.mxu0 %v2175_v6  ;;  %v2072_v20 = vrot.slane %v4021_v21, %v3512_v12  ;;  %v2007_v55 = vsel %vm831_vm6, %v1992_v18, %v3972_v59 }
 0x39c   : > { %v2177_v57 = vmul.f32 %v2166_v15, %v2146_v19  ;;  %v2178_v5 = vmul.f32 %v2170_v39, %v2152_v22  ;;  %v2002_v39 = vsel %vm831_vm6, %v3974_v47, %v1992_v18  ;;  %v2030_v16 = vmul.f32 %v2013_v33, %v2007_v55 }
 0x39d   : > { %v2080_v21 = vmul.f32 %v2072_v20, %v2049_v54  ;;  %v2033_v18 = vmul.f32 %v2025_v34, %v2002_v39  ;;  %v2277_v34 = vld [vmem:[%s546_s17] sm:$0xff] }
 0x39e   : > { %v2092_v60 = vpop.permute.xlu1 %2091  ;;  %2412 = vmatprep.subr.mxu1 %v2178_v5  ;;  %v1997_v29 = vpop.permute.xlu0 %1996 }
 0x39f   : > { %v2097_v50 = vsel %vm932_vm4, %v3990_v9, %v2092_v60  ;;  %v2098_v49 = vsel %vm932_vm4, %v2092_v60, %v3996_v32  ;;  %2413 = vmatpush1.msra.mxu1 %v2177_v57  ;;  %v2000_v45 = vsel %vm831_vm6, %v3972_v59, %v1997_v29  ;;  %v2048_v59 = vsel %vm880_vm5, %v2044_v56, %v3970_v63 }
 0x3a0   : > { %v2128_v26 = vmul.f32 %v2111_v23, %v2097_v50  ;;  %v2129_v27 = vmul.f32 %v2115_v40, %v2098_v49  ;;  %v2031_v6 = vmul.f32 %v2017_v36, %v2000_v45  ;;  %v2001_v63 = vsel %vm831_vm6, %v1997_v29, %v3974_v47  ;;  %v1914_v47 = vld [vmem:[%s4354_s1] sm:$0xf] }
 0x3a1   : > { %v2079_v19 = vmul.f32 %v2068_v30, %v2048_v59  ;;  %v2032_v40 = vmul.f32 %v2021_v2, %v2001_v63  ;;  %v1931_v58 = vrot.slane %v1914_v47, %v3512_v12  ;;  %v1923_v60 = vrot.slane %v1914_v47, %v3514_v13 }
 0x3a2   : > { %v2096_v41 = vpop.permute.xlu1 %2095  ;;  %2343 = vmatprep.subr.mxu0 %v2129_v27  ;;  %v1945_v1 = vpop.permute.xlu0 %1944  ;;  %v1927_v29 = vrot.slane %v1914_v47, %v3508_v10  ;;  %v1919_v61 = vrot.slane %v1914_v47, %v3510_v11 }
 0x3a3   : > { %v2099_v46 = vsel %vm932_vm4, %v3996_v32, %v2096_v41  ;;  %v2105_v8 = vsel %vm932_vm4, %v2096_v41, %v3990_v9  ;;  %2344 = vmatpush1.msra.mxu0 %v2128_v26  ;;  %v2077_v32 = vmul.f32 %v2060_v24, %v2054_v35  ;;  %v1978_v9 = vrot.slane %v4045_v43, %v3512_v12 }
 0x3a4   : > { %v2130_v37 = vmul.f32 %v2119_v25, %v2099_v46  ;;  %v2131_v3 = vmul.f32 %v2123_v28, %v2105_v8  ;;  %2345 = vmatprep.subr.mxu0 %v3916_v14  ;;  %v1960_v7 = vsel %vm782_vm7, %v1945_v1, %v3979_v0 }
 0x3a5   : > { %2346 = vmatpush1.msra.mxu0 %v3889_v48  ;;  %v1983_v22 = vmul.f32 %v1966_v42, %v1960_v7 }
 0x3a6   : > { %v1952_v15 = vpop.permute.xlu1 %1951  ;;  %2347 = vmatprep.subr.mxu0 %v2078_v52  ;;  %2414 = vmatprep.subr.mxu1 %v2131_v3  ;;  %v1950_v44 = vpop.permute.xlu0 %1949 }
 0x3a7   : > { %v1953_v17 = vsel %vm782_vm7, %v3979_v0, %v1950_v44  ;;  %2348 = vmatpush1.msra.mxu0 %v2077_v32  ;;  %2415 = vmatpush1.msra.mxu1 %v2130_v37  ;;  %v1955_v57 = vsel %vm782_vm7, %v1952_v15, %v1945_v1  ;;  %v1954_v0 = vsel %vm782_vm7, %v1950_v44, %v1952_v15  ;;  %v3282_v15 = vld [vmem:[%s4354_s1 + $0x20] sm:$0xf] }
 0x3a8   : > { %v1984_v56 = vmul.f32 %v1970_v51, %v1953_v17  ;;  %2349 = vmatprep.subr.mxu0 %v2031_v6  ;;  %2416 = vmatprep.subr.mxu1 %v3922_v38  ;;  %v1986_v24 = vmul.f32 %v1978_v9, %v1955_v57  ;;  %v1985_v20 = vmul.f32 %v1974_v62, %v1954_v0 }
 0x3a9   : > { %2350 = vmatpush1.msra.mxu0 %v2030_v16  ;;  %2417 = vmatpush1.msra.mxu1 %v3896_v53  ;;  %v2828_v16 = vrot.slane %v3282_v15, %v3510_v11  ;;  %v2832_v17 = vrot.slane %v3282_v15, %v3514_v13  ;;  %v2840_v0 = vrot.slane %v3282_v15, %v3512_v12 }
 0x3aa   : > { %v1901_v5 = vpop.permute.xlu1 %1900  ;;  %2351 = vmatprep.subr.mxu0 %v1984_v56  ;;  %2418 = vmatprep.subr.mxu1 %v2080_v21  ;;  %v1895_v23 = vpop.permute.xlu0 %1894 }
 0x3ab   : > { %2352 = vmatpush1.msra.mxu0 %v1983_v22  ;;  %2419 = vmatpush1.msra.mxu1 %v2079_v19  ;;  %v1913_v50 = vsel %vm734_vm8, %v1895_v23, %v1901_v5 }
 0x3ac   : > { %2420 = vmatprep.subr.mxu1 %v2033_v18  ;;  %v1936_v33 = vmul.f32 %v1919_v61, %v1913_v50  ;;  %v2836_v18 = vrot.slane %v3282_v15, %v3508_v10 }
 0x3ad   : > { %2421 = vmatpush1.msra.mxu1 %v2032_v40 }
 0x3ae   : > { %v1905_v49 = vpop.permute.xlu1 %1904  ;;  %2422 = vmatprep.subr.mxu1 %v1986_v24  ;;  %v1903_v43 = vpop.permute.xlu0 %1902 }
 0x3af   : > { %v1908_v26 = vsel %vm734_vm8, %v1905_v49, %v1895_v23  ;;  %v1906_v27 = vsel %vm734_vm8, %v1901_v5, %v1903_v43  ;;  %v1907_v25 = vsel %vm734_vm8, %v1903_v43, %v1905_v49  ;;  %2423 = vmatpush1.msra.mxu1 %v1985_v20  ;;  %v3281_v5 = vld [vmem:[%s4354_s1 + $0x1c] sm:$0xf] }
 0x3b0   : > { %v1939_v28 = vmul.f32 %v1931_v58, %v1908_v26  ;;  %v1937_v30 = vmul.f32 %v1923_v60, %v1906_v27  ;;  %v1938_v31 = vmul.f32 %v1927_v29, %v1907_v25  ;;  %v2781_v29 = vrot.slane %v3281_v5, %v3510_v11 }
 0x3b1   : > { %v2785_v20 = vrot.slane %v3281_v5, %v3514_v13  ;;  %v2789_v25 = vrot.slane %v3281_v5, %v3508_v10 }
 0x3b2   : > { %2353 = vmatprep.subr.mxu0 %v1937_v30  ;;  %2424 = vmatprep.subr.mxu1 %v1939_v28  ;;  %v2793_v28 = vrot.slane %v3281_v5, %v3512_v12  ;;  %v3280_v30 = vld [vmem:[%s4354_s1 + $0x18] sm:$0xf]  ;;  %v4258_v5 = vld [vmem:[%s4354_s1 + $0x8] sm:$0xf] }
 0x3b3   : > { %2354 = vmatpush1.msra.mxu0 %v1936_v33  ;;  %2425 = vmatpush1.msra.mxu1 %v1938_v31 }
 0x3b4   : > { %3274 = vmatmul.mubr.msk.f32.vlgmr.msra.gmra.mxu0 %vm1163_vm9, %v2277_v34  ;;  %3275 = vmatmul.mubr.msk.f32.vlgmr.msra.gmra.mxu1 %vm1163_vm9, %v2277_v34 }
 0x3b5   : > { %2963 = vmatprep.mubr.f32.mxu0 %v3321_v4  ;;  %3034 = vmatprep.mubr.f32.mxu1 %v3321_v4 }
 0x3bb   : > { %v2318_v35 = vpop.permute.xlu0 %2317 }
 0x474   : > { %v2389_v36 = vpop.f32.mrf.mxu0  ;;  %v2460_v2 = vpop.f32.mrf.mxu1 }
 0x475   : > { %v2390_v41 = vadd.f32 %v2389_v36, %v2318_v35  ;;  %v2461_v1 = vadd.f32 %v2460_v2, %v2318_v35 }
 0x476   : > { %v2391_v4 = vpop.f32.mrf.mxu0  ;;  %v2462_v8 = vpop.f32.mrf.mxu1 }
 0x477   : > { %v4118_v42 = vmax.f32 %v2390_v41, 0.0  ;;  %v4124_v45 = vmax.f32 %v2461_v1, 0.0  ;;  %v2392_v46 = vadd.f32 %v2391_v4, %v2318_v35  ;;  %v2463_v52 = vadd.f32 %v2462_v8, %v2318_v35 }
 0x478   : > { %v2734_v41 = vrot.slane %v3280_v30, %v3510_v11  ;;  %v2738_v1 = vrot.slane %v3280_v30, %v3514_v13 }
 0x479   : > { %2617 = vrot.lane.b32.xlu0 %v4118_v42, %s3325_s23  ;;  %2806 = vrot.lane.b32.xlu1 %v4118_v42, %s3320_s27  ;;  %v4142_v51 = vmax.f32 %v2392_v46, 0.0  ;;  %v4148_v55 = vmax.f32 %v2463_v52, 0.0 }
 0x47d   : > { %2621 = vrot.lane.b32.xlu0 %v4124_v45, %s3325_s23  ;;  %2810 = vrot.lane.b32.xlu1 %v4124_v45, %s3320_s27 }
 0x481   : > { %2570 = vrot.lane.b32.xlu0 %v4118_v42, %s3326_s24  ;;  %2759 = vrot.lane.b32.xlu1 %v4118_v42, %s3322_s15 }
 0x485   : > { %2574 = vrot.lane.b32.xlu0 %v4124_v45, %s3326_s24  ;;  %2763 = vrot.lane.b32.xlu1 %v4124_v45, %s3322_s15 }
 0x489   : > { %2523 = vrot.lane.b32.xlu0 %v4118_v42, %s3327_s25  ;;  %2712 = vrot.lane.b32.xlu1 %v4118_v42, %s3323_s19 }
 0x48d   : > { %2808 = vrot.lane.b32.xlu0 %v4142_v51, %s3320_s27  ;;  %2716 = vrot.lane.b32.xlu1 %v4124_v45, %s3323_s19 }
 0x491   : > { %2812 = vrot.lane.b32.xlu0 %v4148_v55, %s3320_s27  ;;  %2665 = vrot.lane.b32.xlu1 %v4118_v42, %s3324_s20 }
 0x495   : > { %2761 = vrot.lane.b32.xlu0 %v4142_v51, %s3322_s15  ;;  %2669 = vrot.lane.b32.xlu1 %v4124_v45, %s3324_s20 }
 0x499   : > { %2765 = vrot.lane.b32.xlu0 %v4148_v55, %s3322_s15  ;;  %2614 = vrot.lane.b32.xlu1 %v4148_v55, %s3325_s23 }
 0x49d   : > { %2714 = vrot.lane.b32.xlu0 %v4142_v51, %s3323_s19  ;;  %2619 = vrot.lane.b32.xlu1 %v4142_v51, %s3325_s23 }
 0x4a1   : > { %2718 = vrot.lane.b32.xlu0 %v4148_v55, %s3323_s19  ;;  %2567 = vrot.lane.b32.xlu1 %v4148_v55, %s3326_s24  ;;  %s558_s19 = scalar_lea.vmem %s4364_s11, %s3440_s14 }
 0x4a2   : > { %v2890_v37 = vld [vmem:[%s558_s19] sm:$0xff] }
 0x4a5   : > { %2667 = vrot.lane.b32.xlu0 %v4142_v51, %s3324_s20  ;;  %2572 = vrot.lane.b32.xlu1 %v4142_v51, %s3326_s24 }
 0x4a9   : > { %2671 = vrot.lane.b32.xlu0 %v4148_v55, %s3324_s20  ;;  %2520 = vrot.lane.b32.xlu1 %v4148_v55, %s3327_s25 }
 0x4ad   : > { %2527 = vrot.lane.b32.xlu0 %v4124_v45, %s3327_s25  ;;  %2525 = vrot.lane.b32.xlu1 %v4142_v51, %s3327_s25  ;;  %s554_s25 = scalar_lea.vmem %s4363_s10, %s3440_s14  ;;  %s3289_s14 = sshll.u32 %s4367_s22, 4 }
 0x4ae   : > { %s563_s28 = scalar_lea.vmem %s4365_s12, %s3289_s14 }
 0x4b1   : > { %2476 = vrot.lane.b32.xlu0 %v4118_v42, %s3329_s26  ;;  %2470 = vrot.lane.b32.xlu1 %v4148_v55, %s3329_s26 }
 0x4b5   : > { %2480 = vrot.lane.b32.xlu0 %v4124_v45, %s3329_s26  ;;  %2478 = vrot.lane.b32.xlu1 %v4142_v51, %s3329_s26 }
 0x4b9   : > { %2893 = vperm.xlu1 %3311, %v2890_v37  }
 0x4eb   : > { %v4194_v3 = vpop.permute.xlu0 %2617  ;;  %v2807_v54 = vpop.permute.xlu1 %2806 }
 0x4ef   : > { %v4196_v32 = vpop.permute.xlu0 %2621  ;;  %v2811_v9 = vpop.permute.xlu1 %2810 }
 0x4f3   : > { %v4198_v62 = vpop.permute.xlu0 %2570  ;;  %v2760_v59 = vpop.permute.xlu1 %2759 }
 0x4f7   : > { %v4200_v6 = vpop.permute.xlu0 %2574  ;;  %v2764_v7 = vpop.permute.xlu1 %2763 }
 0x4fb   : > { %v4205_v44 = vpop.permute.xlu0 %2523  ;;  %v2713_v39 = vpop.permute.xlu1 %2712 }
 0x4ff   : > { %v2809_v21 = vpop.permute.xlu0 %2808  ;;  %v2717_v63 = vpop.permute.xlu1 %2716 }
 0x500   : > { %v2814_v56 = vsel %vm1079_vm1, %v2807_v54, %v2809_v21  ;;  %v2815_v19 = vsel %vm1079_vm1, %v2809_v21, %v2811_v9 }
 0x501   : > { %v2845_v22 = vmul.f32 %v2828_v16, %v2814_v56  ;;  %v2846_v57 = vmul.f32 %v2832_v17, %v2815_v19  ;;  %v4247_v17 = vld [vmem:[%s4354_s1 + $0xc] sm:$0xf] }
 0x503   : > { %v2813_v47 = vpop.permute.xlu0 %2812  ;;  %2913 = vmatprep.subr.mxu0 %v2846_v57  ;;  %v4216_v23 = vpop.permute.xlu1 %2665 }
 0x504   : > { %v2816_v40 = vsel %vm1079_vm1, %v2811_v9, %v2813_v47  ;;  %v2822_v24 = vsel %vm1079_vm1, %v2813_v47, %v2807_v54  ;;  %2914 = vmatpush1.msra.mxu0 %v2845_v22  ;;  %v2742_v9 = vrot.slane %v3280_v30, %v3508_v10 }
 0x505   : > { %v2847_v58 = vmul.f32 %v2836_v18, %v2816_v40  ;;  %v2848_v60 = vmul.f32 %v2840_v0, %v2822_v24  ;;  %v2636_v0 = vrot.slane %v4247_v17, %v3510_v11  ;;  %v2640_v40 = vrot.slane %v4247_v17, %v3514_v13 }
 0x507   : > { %v2762_v61 = vpop.permute.xlu0 %2761  ;;  %2984 = vmatprep.subr.mxu1 %v2848_v60  ;;  %v4222_v50 = vpop.permute.xlu1 %2669  ;;  %v4271_v60 = vld [vmem:[%s4354_s1 + $0x4] sm:$0xf] }
 0x508   : > { %v2767_v49 = vsel %vm1030_vm2, %v2760_v59, %v2762_v61  ;;  %v2768_v43 = vsel %vm1030_vm2, %v2762_v61, %v2764_v7  ;;  %2985 = vmatpush1.msra.mxu1 %v2847_v58 }
 0x509   : > { %v2798_v26 = vmul.f32 %v2781_v29, %v2767_v49  ;;  %v2799_v27 = vmul.f32 %v2785_v20, %v2768_v43  ;;  %v2644_v43 = vrot.slane %v4247_v17, %v3508_v10 }
 0x50b   : > { %v2766_v31 = vpop.permute.xlu0 %2765  ;;  %2915 = vmatprep.subr.mxu0 %v2799_v27  ;;  %v4231_v33 = vpop.permute.xlu1 %2614  ;;  %v2589_v27 = vrot.slane %v4258_v5, %v3510_v11 }
 0x50c   : > { %v2769_v34 = vsel %vm1030_vm2, %v2764_v7, %v2766_v31  ;;  %v2775_v35 = vsel %vm1030_vm2, %v2766_v31, %v2760_v59  ;;  %2916 = vmatpush1.msra.mxu0 %v2798_v26  ;;  %v2746_v59 = vrot.slane %v3280_v30, %v3512_v12  ;;  %v3279_v7 = vld [vmem:[%s4354_s1 + $0x14] sm:$0xf]  ;;  %v2593_v30 = vrot.slane %v4258_v5, %v3514_v13 }
 0x50d   : > { %v2800_v36 = vmul.f32 %v2789_v25, %v2769_v34  ;;  %v2801_v2 = vmul.f32 %v2793_v28, %v2775_v35  ;;  %v2687_v57 = vrot.slane %v3279_v7, %v3510_v11  ;;  %v2691_v18 = vrot.slane %v3279_v7, %v3514_v13 }
 0x50e   : > { %v2695_v61 = vrot.slane %v3279_v7, %v3508_v10  ;;  %v2699_v49 = vrot.slane %v3279_v7, %v3512_v12  ;;  %v2601_v25 = vrot.slane %v4258_v5, %v3512_v12  ;;  %v2630_v28 = vsel %vm880_vm5, %v4231_v33, %v4194_v3 }
 0x50f   : > { %v2715_v4 = vpop.permute.xlu0 %2714  ;;  %2986 = vmatprep.subr.mxu1 %v2801_v2  ;;  %v2620_v46 = vpop.permute.xlu1 %2619  ;;  %v2597_v31 = vrot.slane %v4258_v5, %v3508_v10  ;;  %v2542_v35 = vrot.slane %v4271_v60, %v3510_v11 }
 0x510   : > { %v2720_v8 = vsel %vm981_vm3, %v2713_v39, %v2715_v4  ;;  %v2721_v52 = vsel %vm981_vm3, %v2715_v4, %v2717_v63  ;;  %2987 = vmatpush1.msra.mxu1 %v2800_v36  ;;  %v2623_v26 = vsel %vm880_vm5, %v4194_v3, %v2620_v46 }
 0x511   : > { %v2751_v37 = vmul.f32 %v2734_v41, %v2720_v8  ;;  %v2752_v54 = vmul.f32 %v2738_v1, %v2721_v52  ;;  %v2546_v1 = vrot.slane %v4271_v60, %v3514_v13  ;;  %v2654_v4 = vmul.f32 %v2640_v40, %v2623_v26 }
 0x513   : > { %v2719_v15 = vpop.permute.xlu0 %2718  ;;  %2917 = vmatprep.subr.mxu0 %v2752_v54  ;;  %v2568_v16 = vpop.permute.xlu1 %2567  ;;  %v2625_v54 = vsel %vm880_vm5, %v4196_v32, %v4231_v33 }
 0x514   : > { %v2722_v21 = vsel %vm981_vm3, %v2717_v63, %v2719_v15  ;;  %v2728_v56 = vsel %vm981_vm3, %v2719_v15, %v2713_v39  ;;  %2918 = vmatpush1.msra.mxu0 %v2751_v37  ;;  %v2648_v39 = vrot.slane %v4247_v17, %v3512_v12  ;;  %v2583_v8 = vsel %vm831_vm6, %v2568_v16, %v4198_v62 }
 0x515   : > { %v2753_v19 = vmul.f32 %v2742_v9, %v2722_v21  ;;  %v2754_v22 = vmul.f32 %v2746_v59, %v2728_v56  ;;  %v2550_v9 = vrot.slane %v4271_v60, %v3508_v10  ;;  %v2606_v15 = vmul.f32 %v2589_v27, %v2583_v8 }
 0x516   : > { %v2656_v21 = vmul.f32 %v2648_v39, %v2625_v54 }
 0x517   : > { %v2668_v47 = vpop.permute.xlu0 %2667  ;;  %2988 = vmatprep.subr.mxu1 %v2754_v22  ;;  %v2573_v63 = vpop.permute.xlu1 %2572 }
 0x518   : > { %v2673_v24 = vsel %vm932_vm4, %v4216_v23, %v2668_v47  ;;  %v2674_v58 = vsel %vm932_vm4, %v2668_v47, %v4222_v50  ;;  %2989 = vmatpush1.msra.mxu1 %v2753_v19  ;;  %v2576_v2 = vsel %vm831_vm6, %v4198_v62, %v2573_v63  ;;  %v2624_v62 = vsel %vm880_vm5, %v2620_v46, %v4196_v32 }
 0x519   : > { %v2704_v29 = vmul.f32 %v2687_v57, %v2673_v24  ;;  %v2705_v20 = vmul.f32 %v2691_v18, %v2674_v58  ;;  %v2607_v59 = vmul.f32 %v2593_v30, %v2576_v2  ;;  %v2577_v32 = vsel %vm831_vm6, %v2573_v63, %v4200_v6 }
 0x51a   : > { %v2655_v56 = vmul.f32 %v2644_v43, %v2624_v62 }
 0x51b   : > { %v2672_v34 = vpop.permute.xlu0 %2671  ;;  %2919 = vmatprep.subr.mxu0 %v2705_v20  ;;  %v2521_v36 = vpop.permute.xlu1 %2520 }
 0x51c   : > { %v2675_v41 = vsel %vm932_vm4, %v4222_v50, %v2672_v34  ;;  %v2681_v3 = vsel %vm932_vm4, %v2672_v34, %v4216_v23  ;;  %2920 = vmatpush1.msra.mxu0 %v2704_v29  ;;  %v2653_v50 = vmul.f32 %v2636_v0, %v2630_v28  ;;  %v2554_v23 = vrot.slane %v4271_v60, %v3512_v12 }
 0x51d   : > { %v2706_v52 = vmul.f32 %v2695_v61, %v2675_v41  ;;  %v2707_v37 = vmul.f32 %v2699_v49, %v2681_v3  ;;  %2921 = vmatprep.subr.mxu0 %v4142_v51  ;;  %v2536_v51 = vsel %vm782_vm7, %v2521_v36, %v4205_v44  ;;  %v2853_v61 = vld [vmem:[%s554_s25] sm:$0xff] }
 0x51e   : > { %2922 = vmatpush1.msra.mxu0 %v4118_v42  ;;  %v2578_v42 = vsel %vm831_vm6, %v4200_v6, %v2568_v16  ;;  %v2559_v19 = vmul.f32 %v2542_v35, %v2536_v51  ;;  %v2490_v6 = vld [vmem:[%s4354_s1] sm:$0xf] }
 0x51f   : > { %v2528_v7 = vpop.permute.xlu0 %2527  ;;  %2923 = vmatprep.subr.mxu0 %v2654_v4  ;;  %2990 = vmatprep.subr.mxu1 %v2707_v37  ;;  %v2526_v33 = vpop.permute.xlu1 %2525  ;;  %v2609_v16 = vmul.f32 %v2601_v25, %v2578_v42  ;;  %v2507_v5 = vrot.slane %v2490_v6, %v3512_v12  ;;  %v2503_v47 = vrot.slane %v2490_v6, %v3508_v10 }
 0x520   : > { %v2529_v17 = vsel %vm782_vm7, %v4205_v44, %v2526_v33  ;;  %2924 = vmatpush1.msra.mxu0 %v2653_v50  ;;  %2991 = vmatpush1.msra.mxu1 %v2706_v52  ;;  %v2531_v22 = vsel %vm782_vm7, %v2528_v7, %v2521_v36  ;;  %v2530_v44 = vsel %vm782_vm7, %v2526_v33, %v2528_v7 }
 0x521   : > { %v2560_v46 = vmul.f32 %v2546_v1, %v2529_v17  ;;  %2925 = vmatprep.subr.mxu0 %v2607_v59  ;;  %2992 = vmatprep.subr.mxu1 %v4148_v55  ;;  %v2608_v55 = vmul.f32 %v2597_v31, %v2577_v32  ;;  %v2562_v0 = vmul.f32 %v2554_v23, %v2531_v22 }
 0x522   : > { %2926 = vmatpush1.msra.mxu0 %v2606_v15  ;;  %2993 = vmatpush1.msra.mxu1 %v4124_v45  ;;  %v2499_v45 = vrot.slane %v2490_v6, %v3514_v13  ;;  %v2561_v63 = vmul.f32 %v2550_v9, %v2530_v44  ;;  %v2495_v39 = vrot.slane %v2490_v6, %v3510_v11 }
 0x523   : > { %v2477_v57 = vpop.permute.xlu0 %2476  ;;  %2927 = vmatprep.subr.mxu0 %v2560_v46  ;;  %2994 = vmatprep.subr.mxu1 %v2656_v21  ;;  %v2471_v18 = vpop.permute.xlu1 %2470 }
 0x524   : > { %2928 = vmatpush1.msra.mxu0 %v2559_v19  ;;  %2995 = vmatpush1.msra.mxu1 %v2655_v56  ;;  %v2489_v40 = vsel %vm734_vm8, %v2471_v18, %v2477_v57 }
 0x525   : > { %2996 = vmatprep.subr.mxu1 %v2609_v16  ;;  %v2512_v20 = vmul.f32 %v2495_v39, %v2489_v40 }
 0x526   : > { %2997 = vmatpush1.msra.mxu1 %v2608_v55 }
 0x527   : > { %v2481_v24 = vpop.permute.xlu0 %2480  ;;  %2998 = vmatprep.subr.mxu1 %v2562_v0  ;;  %v2479_v58 = vpop.permute.xlu1 %2478 }
 0x528   : > { %v2484_v60 = vsel %vm734_vm8, %v2481_v24, %v2471_v18  ;;  %v2482_v12 = vsel %vm734_vm8, %v2477_v57, %v2479_v58  ;;  %v2483_v13 = vsel %vm734_vm8, %v2479_v58, %v2481_v24  ;;  %2999 = vmatpush1.msra.mxu1 %v2561_v63 }
 0x529   : > { %v2515_v10 = vmul.f32 %v2507_v5, %v2484_v60  ;;  %v2513_v29 = vmul.f32 %v2499_v45, %v2482_v12  ;;  %v2514_v11 = vmul.f32 %v2503_v47, %v2483_v13 }
 0x52b   : > { %2929 = vmatprep.subr.mxu0 %v2513_v29  ;;  %3000 = vmatprep.subr.mxu1 %v2515_v10 }
 0x52c   : > { %2930 = vmatpush1.msra.mxu0 %v2512_v20  ;;  %3001 = vmatpush1.msra.mxu1 %v2514_v11 }
 0x52d   : > { %3283 = vmatmul.mubr.msk.f32.vlgmr.msra.gmra.mxu0 %vm1163_vm9, %v2853_v61  ;;  %3284 = vmatmul.mubr.msk.f32.vlgmr.msra.gmra.mxu1 %vm1163_vm9, %v2853_v61 }
 0x534   : > { %v2894_v49 = vpop.permute.xlu1 %2893 }
 0x5ed   : > { %v2965_v43 = vpop.f32.mrf.mxu0  ;;  %v3036_v26 = vpop.f32.mrf.mxu1 }
 0x5ee   : > { %v2966_v27 = vadd.f32 %v2965_v43, %v2894_v49  ;;  %v3037_v25 = vadd.f32 %v3036_v26, %v2894_v49 }
 0x5ef   : > { %v2967_v28 = vpop.f32.mrf.mxu0  ;;  %v3038_v30 = vpop.f32.mrf.mxu1 }
 0x5f0   : > { %v3041_v31 = vadd.f32 %v2966_v27, %v3889_v48  ;;  %v3043_v34 = vadd.f32 %v3037_v25, %v3896_v53  ;;  %v2968_v35 = vadd.f32 %v2967_v28, %v2894_v49  ;;  %v3039_v36 = vadd.f32 %v3038_v30, %v2894_v49 }
 0x5f2   : > { %v3042_v2 = vadd.f32 %v2968_v35, %v3916_v14  ;;  %v3044_v41 = vadd.f32 %v3039_v36, %v3922_v38  ;;  %v3045_v3 = vmax.f32 %v3041_v31, 0.0  ;;  %v3047_v1 = vmax.f32 %v3043_v34, 0.0 }
 0x5f4   : > { %v3046_v4 = vmax.f32 %v3042_v2, 0.0  ;;  %v3048_v8 = vmax.f32 %v3044_v41, 0.0 }
 0x5f6   : > { %v3290_v52 = vpack.c.bf16 %v3046_v4, %v3045_v3  ;;  %v3291_v37 = vpack.c.bf16 %v3048_v8, %v3047_v1 }
 0x5f8   : > { %3065 = vst [vmem:[%s563_s28] sm:$0xff] %v3290_v52  ;;  %3066 = vst [vmem:[%s563_s28 + $0x8] sm:$0xff] %v3291_v37 }
 0x5f9 PF: > { %s22_s21 = sadd.s32 1, %s3318_s21  }
 0x5fa   : > { %p19_p4 = scmp.ge.s32.totalorder %s22_s21, 5  }
 0x5fc   :  { %21 = sbr.rel (!%p19_p4) target bundleno = 1 (0x1), region = 132 }

</bundles_post_ra>
